<compile_context>
chip_gen: v6e
topology: v6e:2x2x1
jax: 0.10.0
libtpu: 0.0.40
codegen_flags: <defaults>
</compile_context>

<pallas_src>
import jax
import jax.numpy as jnp
from jax.experimental import pallas as pl
from jax.experimental.pallas import tpu as pltpu

N_HIDDEN = 400   # num_int_nodes in the PyTorch module
N_CODE = 2       # num_out_nodes in the PyTorch module


def _round_up(x, m):
    return (x + m - 1) // m * m


def _autoencoder_kernel(x_ref,
                        w1_ref, b1_ref,
                        w2_ref, b2_ref,
                        w3_ref, b3_ref,
                        w4_ref, b4_ref,
                        enc_ref, dec_ref):
    # x arrives f32 straight from the caller; cast to bf16 on the VPU right
    # before the MXU dot (no separate wrapper-side cast pass over HBM).
    x = x_ref[...].astype(jnp.bfloat16)               # [TILE_B, n_in_pad]

    # ---- encoder ----------------------------------------------------------
    # Linear(n_input, 400) + tanh : MXU (bf16 x bf16 -> f32 acc), tanh on EUP.
    h1 = jnp.tanh(
        jnp.dot(x, w1_ref[...], preferred_element_type=jnp.float32)
        + b1_ref[...])                                # [TILE_B, 400] f32

    # Linear(400, 2) + tanh
    enc = jnp.tanh(
        jnp.dot(h1.astype(w2_ref.dtype), w2_ref[...],
                preferred_element_type=jnp.float32)
        + b2_ref[...])                                # [TILE_B, 2] f32

    # ---- decoder ----------------------------------------------------------
    # Linear(2, 400) + tanh: a K=2 contraction is pure MXU fill/drain latency,
    # so do it as a VPU broadcast multiply-add instead (all f32).
    h3 = jnp.tanh(enc[:, 0:1] * w3_ref[0:1, :]
                  + enc[:, 1:2] * w3_ref[1:2, :]
                  + b3_ref[...])                      # [TILE_B, 400] f32

    # Linear(400, n_input) + sigmoid.  sigmoid(v) == 0.5*(tanh(v/2)+1):
    # one EUP transcendental on the widest tensor, exact, no overflow path.
    logits = (jnp.dot(h3.astype(w4_ref.dtype), w4_ref[...],
                      preferred_element_type=jnp.float32)
              + b4_ref[...])                          # [TILE_B, n_in_pad] f32
    dec = 0.5 * (jnp.tanh(0.5 * logits) + 1.0)

    enc_ref[...] = enc.astype(enc_ref.dtype)
    dec_ref[...] = dec.astype(dec_ref.dtype)          # lane-dense unmasked vst


def _vmem_capacity_bytes():
    """Physical VMEM of the local chip; conservative (v7x-sized) fallback."""
    try:
        info = pltpu.get_tpu_info()
        cap = int(getattr(info, "vmem_capacity_bytes", 0) or 0)
        if cap > 0:
            return cap
    except Exception:
        pass
    return 64 << 20


def _footprint_bytes(tile_b, n_in, n_hidden, n_code):
    """VMEM footprint: single-buffered weights, double-buffered activations."""
    weights = (n_in * n_hidden * 2                 # w1 (bf16, Buffered(1))
               + n_hidden * n_code * 2             # w2 (bf16)
               + n_code * n_hidden * 4             # w3 (f32)
               + n_hidden * n_in * 2               # w4 (bf16)
               + (2 * n_hidden + n_code + n_in) * 4)   # biases (f32)
    blocks = 2 * tile_b * (n_in * 4 + n_code * 4 + n_in * 4)   # x / enc / dec
    temps = 4 * tile_b * (2 * n_hidden + n_in + n_code)        # f32 temporaries
    return weights + blocks + temps


def my_autoencoder_forward(x_nchw, params):
    """Forward pass of MyAutoencoder.

    x_nchw: [B, C, H, W] float32 (NCHW, like the PyTorch module's input).
    params: dict with pre-transposed weights w1..w4 ([in, out]; w1/w2/w4 bf16,
            w3 f32) and f32 biases b1..b4 ([1, out]).
    Returns (encodee [B, 2], decodee [B, n_input]) just like the module.
    """
    B = x_nchw.shape[0]
    n_input = int(x_nchw.size) // B
    x_flat = x_nchw.reshape(B, n_input)               # nn.Flatten(), stays f32

    w1, b1 = params["w1"], params["b1"]
    w2, b2 = params["w2"], params["b2"]
    w3, b3 = params["w3"], params["b3"]
    w4, b4 = params["w4"], params["b4"]
    n_hidden = w1.shape[1]                            # 400
    n_code = w2.shape[1]                              # 2

    # Lane-dense n_input: pad to a multiple of 128 so the wide dec store stays
    # an unmasked vst and x/w1/w4 keep aligned lane layouts. No-op when
    # n_input is already aligned (e.g. 1024). Zero pad -> no effect on math.
    n_in_pad = _round_up(n_input, 128)
    if n_in_pad != n_input:
        pad_c = n_in_pad - n_input
        x_flat = jnp.pad(x_flat, ((0, 0), (0, pad_c)))
        w1 = jnp.pad(w1, ((0, pad_c), (0, 0)))
        w4 = jnp.pad(w4, ((0, 0), (0, pad_c)))
        b4 = jnp.pad(b4, ((0, 0), (0, pad_c)))

    # VMEM budget: 75% of physical (~96 MiB on v5e/v6e, ~48 MiB on v7x).
    vmem_cap = _vmem_capacity_bytes()
    budget = (vmem_cap * 3) // 4
    dual_tc = vmem_cap <= (64 << 20)    # v7x heuristic: half-size VMEM, 2 TCs

    # Batch tile: multiple of 16, large enough to amortize the ~0.35us
    # per-grid-step overhead; cap 512 (v5e/v6e) / 256 (v7x); ensure grid_b>=2
    # on dual-TC chips when the batch allows; shrink if VMEM demands it.
    cap_tile = 256 if dual_tc else 512
    tile_b = min(cap_tile, _round_up(B, 16))
    if dual_tc and B > 16 and _round_up(B, tile_b) // tile_b < 2:
        tile_b = min(tile_b, _round_up((B + 1) // 2, 16))
    while tile_b > 16 and _footprint_bytes(tile_b, n_in_pad, n_hidden,
                                           n_code) > budget:
        tile_b = max(16, _round_up(tile_b // 2, 16))
    b_pad = _round_up(B, tile_b)
    grid_b = b_pad // tile_b

    x_in = x_flat
    if b_pad != B:
        x_in = jnp.pad(x_in, ((0, b_pad - B), (0, 0)))

    vmem_bytes = min(
        max(_footprint_bytes(tile_b, n_in_pad, n_hidden, n_code) + (2 << 20),
            16 << 20),
        budget)
    # TODO(synk): for n_input large enough that resident w1/w4 overflow even
    # the shrunk-tile budget (roughly n_input >= 12-15k on v7x's 64 MiB), add
    # a K-reduction grid axis over n_input for layer 1 (f32 acc scratch +
    # pl.when init, axis last / "arbitrary") and N-tiling over n_input for
    # layer 4 / dec.

    def weight_spec(shape):
        # Constant index_map across the batch grid -> block is never
        # re-fetched; single-buffer it to halve resident weight VMEM.
        return pl.BlockSpec(shape, lambda i: (0, 0),
                            pipeline_mode=pl.Buffered(1))

    enc, dec = pl.pallas_call(
        _autoencoder_kernel,
        out_shape=(
            jax.ShapeDtypeStruct((b_pad, n_code), jnp.float32),
            jax.ShapeDtypeStruct((b_pad, n_in_pad), jnp.float32),
        ),
        grid=(grid_b,),
        in_specs=[
            pl.BlockSpec((tile_b, n_in_pad), lambda i: (i, 0)),   # x (f32)
            weight_spec((n_in_pad, n_hidden)),                    # w1 (bf16)
            weight_spec((1, n_hidden)),                           # b1
            weight_spec((n_hidden, n_code)),                      # w2 (bf16)
            weight_spec((1, n_code)),                             # b2
            weight_spec((n_code, n_hidden)),                      # w3 (f32)
            weight_spec((1, n_hidden)),                           # b3
            weight_spec((n_hidden, n_in_pad)),                    # w4 (bf16)
            weight_spec((1, n_in_pad)),                           # b4
        ],
        out_specs=(
            pl.BlockSpec((tile_b, n_code), lambda i: (i, 0)),
            pl.BlockSpec((tile_b, n_in_pad), lambda i: (i, 0)),
        ),
        compiler_params=pltpu.CompilerParams(
            dimension_semantics=("parallel",),
            vmem_limit_bytes=int(vmem_bytes),
        ),
    )(x_in, w1, b1, w2, b2, w3, b3, w4, b4)

    return enc[:B], dec[:B, :n_input]


def init_params(key, n_input, n_hidden=N_HIDDEN, n_code=N_CODE):
    """Deterministic synthetic init (PyTorch-Linear-like uniform fan-in).

    Weights pre-transposed to [in, out]; MXU weights stored in bf16, the tiny
    w3 (VPU broadcast-FMA path) and all biases in f32."""
    ks = jax.random.split(key, 8)

    def lin(kw, kb, fan_in, fan_out, w_dtype):
        bound = 1.0 / jnp.sqrt(jnp.float32(fan_in))
        w = jax.random.uniform(kw, (fan_in, fan_out), jnp.float32, -bound, bound)
        b = jax.random.uniform(kb, (1, fan_out), jnp.float32, -bound, bound)
        return w.astype(w_dtype), b

    w1, b1 = lin(ks[0], ks[1], n_input, n_hidden, jnp.bfloat16)
    w2, b2 = lin(ks[2], ks[3], n_hidden, n_code, jnp.bfloat16)
    w3, b3 = lin(ks[4], ks[5], n_code, n_hidden, jnp.float32)
    w4, b4 = lin(ks[6], ks[7], n_hidden, n_input, jnp.bfloat16)
    return {"w1": w1, "b1": b1, "w2": w2, "b2": b2,
            "w3": w3, "b3": b3, "w4": w4, "b4": b4}


def _reference_forward(x_nchw, params):
    """Plain-JAX reference with the same dtype strategy (bf16 MXU, f32 acc)."""
    B = x_nchw.shape[0]
    x = x_nchw.reshape(B, -1).astype(jnp.bfloat16)
    h1 = jnp.tanh(jnp.dot(x, params["w1"],
                          preferred_element_type=jnp.float32) + params["b1"])
    enc = jnp.tanh(jnp.dot(h1.astype(jnp.bfloat16), params["w2"],
                           preferred_element_type=jnp.float32) + params["b2"])
    h3 = jnp.tanh(enc @ params["w3"] + params["b3"])
    dec = jax.nn.sigmoid(jnp.dot(h3.astype(jnp.bfloat16), params["w4"],
                                 preferred_element_type=jnp.float32) + params["b4"])
    return enc, dec


if __name__ == "__main__":
    key = jax.random.PRNGKey(0)
    k_x, k_p = jax.random.split(key)

    # Small NCHW input: batch=2, channels=4, spatial=16x16 -> n_input = 1024
    # (lane-dense: multiple of 128, so the n_input padding path is a no-op).
    B, C, H, W = 2, 4, 16, 16
    n_input = C * H * W
    x = jax.random.uniform(k_x, (B, C, H, W), jnp.float32)

    params = init_params(k_p, n_input)

    enc, dec = my_autoencoder_forward(x, params)
    enc, dec = jax.block_until_ready((enc, dec))

    # Sanity check against a plain-JAX reference using the same weights/dtypes.
    enc_ref, dec_ref = _reference_forward(x, params)
    assert enc.shape == (B, N_CODE) and dec.shape == (B, n_input)
    assert jnp.allclose(enc, enc_ref, atol=5e-3, rtol=5e-3), \
        float(jnp.max(jnp.abs(enc - enc_ref)))
    assert jnp.allclose(dec, dec_ref, atol=5e-3, rtol=5e-3), \
        float(jnp.max(jnp.abs(dec - dec_ref)))

    print("KERNEL_OK")
</pallas_src>

<mosaic_0001>
module attributes {stable_mosaic.version = 11 : i64} {
  func.func @_autoencoder_kernel(%arg0: i32, %arg1: memref<16x1024xf32, #tpu.memory_space<vmem>>, %arg2: memref<1024x400xbf16, #tpu.memory_space<vmem>>, %arg3: memref<1x400xf32, #tpu.memory_space<vmem>>, %arg4: memref<400x2xbf16, #tpu.memory_space<vmem>>, %arg5: memref<1x2xf32, #tpu.memory_space<vmem>>, %arg6: memref<2x400xf32, #tpu.memory_space<vmem>>, %arg7: memref<1x400xf32, #tpu.memory_space<vmem>>, %arg8: memref<400x1024xbf16, #tpu.memory_space<vmem>>, %arg9: memref<1x1024xf32, #tpu.memory_space<vmem>>, %arg10: memref<16x2xf32, #tpu.memory_space<vmem>>, %arg11: memref<16x1024xf32, #tpu.memory_space<vmem>>) attributes {dimension_semantics = [#tpu.dimension_semantics<parallel>], iteration_bounds = array<i64: 1>, scalar_prefetch = 0 : i64, scratch_operands = 0 : i64, tpu.core_type = #tpu.core_type<tc>, window_params = [{transform_indices = @transform_0, window_bounds = array<i64: 16, 1024>}, {pipeline_mode = #tpu.pipeline_mode<synchronous>, transform_indices = @transform_1, window_bounds = array<i64: 1024, 400>}, {pipeline_mode = #tpu.pipeline_mode<synchronous>, transform_indices = @transform_2, window_bounds = array<i64: 1, 400>}, {pipeline_mode = #tpu.pipeline_mode<synchronous>, transform_indices = @transform_3, window_bounds = array<i64: 400, 2>}, {pipeline_mode = #tpu.pipeline_mode<synchronous>, transform_indices = @transform_4, window_bounds = array<i64: 1, 2>}, {pipeline_mode = #tpu.pipeline_mode<synchronous>, transform_indices = @transform_5, window_bounds = array<i64: 2, 400>}, {pipeline_mode = #tpu.pipeline_mode<synchronous>, transform_indices = @transform_6, window_bounds = array<i64: 1, 400>}, {pipeline_mode = #tpu.pipeline_mode<synchronous>, transform_indices = @transform_7, window_bounds = array<i64: 400, 1024>}, {pipeline_mode = #tpu.pipeline_mode<synchronous>, transform_indices = @transform_8, window_bounds = array<i64: 1, 1024>}, {transform_indices = @transform_9, window_bounds = array<i64: 16, 2>}, {transform_indices = @transform_10, window_bounds = array<i64: 16, 1024>}]} {
    %c0 = arith.constant 0 : index
    %c0_0 = arith.constant 0 : index
    %0 = vector.load %arg1[%c0, %c0_0] : memref<16x1024xf32, #tpu.memory_space<vmem>>, vector<16x1024xf32>
    %1 = arith.truncf %0 : vector<16x1024xf32> to vector<16x1024xbf16>
    %c0_1 = arith.constant 0 : index
    %c0_2 = arith.constant 0 : index
    %2 = vector.load %arg2[%c0_1, %c0_2] : memref<1024x400xbf16, #tpu.memory_space<vmem>>, vector<1024x400xbf16>
    %cst = arith.constant dense<0.000000e+00> : vector<16x400xf32>
    %3 = tpu.matmul %1, %2, %cst {dimension_numbers = #tpu.dot_dimension_numbers<[1], [0], [0], [1], [0, 0, 1, 1], [], []>} : vector<16x1024xbf16>, vector<1024x400xbf16>, vector<16x400xf32> -> vector<16x400xf32>
    %c0_3 = arith.constant 0 : index
    %c0_4 = arith.constant 0 : index
    %4 = vector.load %arg3[%c0_3, %c0_4] : memref<1x400xf32, #tpu.memory_space<vmem>>, vector<1x400xf32>
    %5 = vector.broadcast %4 : vector<1x400xf32> to vector<16x400xf32>
    %6 = arith.addf %3, %5 : vector<16x400xf32>
    %7 = math.tanh %6 : vector<16x400xf32>
    %8 = arith.truncf %7 : vector<16x400xf32> to vector<16x400xbf16>
    %c0_5 = arith.constant 0 : index
    %c0_6 = arith.constant 0 : index
    %9 = vector.load %arg4[%c0_5, %c0_6] : memref<400x2xbf16, #tpu.memory_space<vmem>>, vector<400x2xbf16>
    %cst_7 = arith.constant dense<0.000000e+00> : vector<16x2xf32>
    %10 = tpu.matmul %8, %9, %cst_7 {dimension_numbers = #tpu.dot_dimension_numbers<[1], [0], [0], [1], [0, 0, 1, 1], [], []>} : vector<16x400xbf16>, vector<400x2xbf16>, vector<16x2xf32> -> vector<16x2xf32>
    %c0_8 = arith.constant 0 : index
    %c0_9 = arith.constant 0 : index
    %11 = vector.load %arg5[%c0_8, %c0_9] : memref<1x2xf32, #tpu.memory_space<vmem>>, vector<1x2xf32>
    %12 = vector.broadcast %11 : vector<1x2xf32> to vector<16x2xf32>
    %13 = arith.addf %10, %12 : vector<16x2xf32>
    %14 = math.tanh %13 : vector<16x2xf32>
    %15 = vector.extract_strided_slice %14 {offsets = [0, 0], sizes = [16, 1], strides = [1, 1]} : vector<16x2xf32> to vector<16x1xf32>
    %c0_10 = arith.constant 0 : index
    %c0_11 = arith.constant 0 : index
    %16 = vector.load %arg6[%c0_10, %c0_11] : memref<2x400xf32, #tpu.memory_space<vmem>>, vector<1x400xf32>
    %17 = vector.broadcast %15 : vector<16x1xf32> to vector<16x400xf32>
    %18 = vector.broadcast %16 : vector<1x400xf32> to vector<16x400xf32>
    %19 = arith.mulf %17, %18 : vector<16x400xf32>
    %20 = vector.extract_strided_slice %14 {offsets = [0, 1], sizes = [16, 1], strides = [1, 1]} : vector<16x2xf32> to vector<16x1xf32>
    %c1 = arith.constant 1 : index
    %c0_12 = arith.constant 0 : index
    %21 = vector.load %arg6[%c1, %c0_12] : memref<2x400xf32, #tpu.memory_space<vmem>>, vector<1x400xf32>
    %22 = vector.broadcast %20 : vector<16x1xf32> to vector<16x400xf32>
    %23 = vector.broadcast %21 : vector<1x400xf32> to vector<16x400xf32>
    %24 = arith.mulf %22, %23 : vector<16x400xf32>
    %25 = arith.addf %19, %24 : vector<16x400xf32>
    %c0_13 = arith.constant 0 : index
    %c0_14 = arith.constant 0 : index
    %26 = vector.load %arg7[%c0_13, %c0_14] : memref<1x400xf32, #tpu.memory_space<vmem>>, vector<1x400xf32>
    %27 = vector.broadcast %26 : vector<1x400xf32> to vector<16x400xf32>
    %28 = arith.addf %25, %27 : vector<16x400xf32>
    %29 = math.tanh %28 : vector<16x400xf32>
    %30 = arith.truncf %29 : vector<16x400xf32> to vector<16x400xbf16>
    %c0_15 = arith.constant 0 : index
    %c0_16 = arith.constant 0 : index
    %31 = vector.load %arg8[%c0_15, %c0_16] : memref<400x1024xbf16, #tpu.memory_space<vmem>>, vector<400x1024xbf16>
    %cst_17 = arith.constant dense<0.000000e+00> : vector<16x1024xf32>
    %32 = tpu.matmul %30, %31, %cst_17 {dimension_numbers = #tpu.dot_dimension_numbers<[1], [0], [0], [1], [0, 0, 1, 1], [], []>} : vector<16x400xbf16>, vector<400x1024xbf16>, vector<16x1024xf32> -> vector<16x1024xf32>
    %c0_18 = arith.constant 0 : index
    %c0_19 = arith.constant 0 : index
    %33 = vector.load %arg9[%c0_18, %c0_19] : memref<1x1024xf32, #tpu.memory_space<vmem>>, vector<1x1024xf32>
    %34 = vector.broadcast %33 : vector<1x1024xf32> to vector<16x1024xf32>
    %35 = arith.addf %32, %34 : vector<16x1024xf32>
    %cst_20 = arith.constant 5.000000e-01 : f32
    %36 = vector.broadcast %cst_20 : f32 to vector<16x1024xf32>
    %37 = arith.mulf %36, %35 : vector<16x1024xf32>
    %38 = math.tanh %37 : vector<16x1024xf32>
    %cst_21 = arith.constant 1.000000e+00 : f32
    %39 = vector.broadcast %cst_21 : f32 to vector<16x1024xf32>
    %40 = arith.addf %38, %39 : vector<16x1024xf32>
    %cst_22 = arith.constant 5.000000e-01 : f32
    %41 = vector.broadcast %cst_22 : f32 to vector<16x1024xf32>
    %42 = arith.mulf %41, %40 : vector<16x1024xf32>
    %c0_23 = arith.constant 0 : index
    %c0_24 = arith.constant 0 : index
    %43 = vector.load %arg10[%c0_23, %c0_24] : memref<16x2xf32, #tpu.memory_space<vmem>>, vector<16x2xf32>
    tpu.vector_store %arg10[%c0_23, %c0_24], %14 {strides = array<i32>} : memref<16x2xf32, #tpu.memory_space<vmem>>, vector<16x2xf32>,
    %c0_25 = arith.constant 0 : index
    %c0_26 = arith.constant 0 : index
    %44 = vector.load %arg11[%c0_25, %c0_26] : memref<16x1024xf32, #tpu.memory_space<vmem>>, vector<16x1024xf32>
    tpu.vector_store %arg11[%c0_25, %c0_26], %42 {strides = array<i32>} : memref<16x1024xf32, #tpu.memory_space<vmem>>, vector<16x1024xf32>,
    return
  }
  func.func @transform_0(%arg0: i32) -> (i32, i32) {
    %c0_i32 = arith.constant 0 : i32
    %c0_i32_0 = arith.constant 0 : i32
    return %arg0, %c0_i32 : i32, i32
  }
  func.func @transform_1(%arg0: i32) -> (i32, i32) {
    %c0_i32 = arith.constant 0 : i32
    %c0_i32_0 = arith.constant 0 : i32
    %c0_i32_1 = arith.constant 0 : i32
    return %c0_i32, %c0_i32_0 : i32, i32
  }
  func.func @transform_2(%arg0: i32) -> (i32, i32) {
    %c0_i32 = arith.constant 0 : i32
    %c0_i32_0 = arith.constant 0 : i32
    %c0_i32_1 = arith.constant 0 : i32
    return %c0_i32, %c0_i32_0 : i32, i32
  }
  func.func @transform_3(%arg0: i32) -> (i32, i32) {
    %c0_i32 = arith.constant 0 : i32
    %c0_i32_0 = arith.constant 0 : i32
    %c0_i32_1 = arith.constant 0 : i32
    return %c0_i32, %c0_i32_0 : i32, i32
  }
  func.func @transform_4(%arg0: i32) -> (i32, i32) {
    %c0_i32 = arith.constant 0 : i32
    %c0_i32_0 = arith.constant 0 : i32
    %c0_i32_1 = arith.constant 0 : i32
    return %c0_i32, %c0_i32_0 : i32, i32
  }
  func.func @transform_5(%arg0: i32) -> (i32, i32) {
    %c0_i32 = arith.constant 0 : i32
    %c0_i32_0 = arith.constant 0 : i32
    %c0_i32_1 = arith.constant 0 : i32
    return %c0_i32, %c0_i32_0 : i32, i32
  }
  func.func @transform_6(%arg0: i32) -> (i32, i32) {
    %c0_i32 = arith.constant 0 : i32
    %c0_i32_0 = arith.constant 0 : i32
    %c0_i32_1 = arith.constant 0 : i32
    return %c0_i32, %c0_i32_0 : i32, i32
  }
  func.func @transform_7(%arg0: i32) -> (i32, i32) {
    %c0_i32 = arith.constant 0 : i32
    %c0_i32_0 = arith.constant 0 : i32
    %c0_i32_1 = arith.constant 0 : i32
    return %c0_i32, %c0_i32_0 : i32, i32
  }
  func.func @transform_8(%arg0: i32) -> (i32, i32) {
    %c0_i32 = arith.constant 0 : i32
    %c0_i32_0 = arith.constant 0 : i32
    %c0_i32_1 = arith.constant 0 : i32
    return %c0_i32, %c0_i32_0 : i32, i32
  }
  func.func @transform_9(%arg0: i32) -> (i32, i32) {
    %c0_i32 = arith.constant 0 : i32
    %c0_i32_0 = arith.constant 0 : i32
    return %arg0, %c0_i32 : i32, i32
  }
  func.func @transform_10(%arg0: i32) -> (i32, i32) {
    %c0_i32 = arith.constant 0 : i32
    %c0_i32_0 = arith.constant 0 : i32
    return %arg0, %c0_i32 : i32, i32
  }
}

</mosaic_0001>

<bundles_post_ra>
// kernel: tpu_custom_call.1
= control target key start
LH: loop header
LB: loop body
LE: loop exit
PB: predicated region body
PF: predicated region fallthrough
CT: control target
= control target key end

     0   :  { %s6834_s0 = inlined_call_operand.vmem [shape: f32[16,1024], index: 0, kind: input, shape index: {}]   ;;  %s6835_s1 = inlined_call_operand.vmem [shape: bf16[1024,400], index: 1, kind: input, shape index: {}]   ;;  %s6836_s2 = inlined_call_operand.vmem [shape: f32[1,400], index: 2, kind: input, shape index: {}]   ;;  %s6837_s3 = inlined_call_operand.vmem [shape: bf16[400,2], index: 3, kind: input, shape index: {}]   ;;  %s6838_s4 = inlined_call_operand.vmem [shape: f32[1,2], index: 4, kind: input, shape index: {}]   ;;  %s6839_s5 = inlined_call_operand.vmem [shape: f32[2,400], index: 5, kind: input, shape index: {}]   ;;  %s6840_s6 = inlined_call_operand.vmem [shape: f32[1,400], index: 6, kind: input, shape index: {}]   ;;  %s6841_s7 = inlined_call_operand.vmem [shape: bf16[400,1024], index: 7, kind: input, shape index: {}]   ;;  %s6842_s8 = inlined_call_operand.vmem [shape: f32[1,1024], index: 8, kind: input, shape index: {}]   ;;  %s6843_s9 = inlined_call_operand.vmem [shape: f32[16,2], index: 9, kind: output, shape index: {0}]   ;;  %s6844_s10 = inlined_call_operand.hbm [shape: f32[16,1024], index: 10, kind: output, shape index: {1}]  }
   0x1   :  { %v4608_v0 = vld [vmem:[%s6835_s1 + $0xe4] ss:$16 sps:$4 sm:$0xff]   ;;  %v4612_v2 = vld [vmem:[%s6835_s1 + $0xe0] ss:$16 sps:$4 sm:$0xff]   ;;  %v37_v46 = vld [vmem:[%s6834_s0 + $0x8] sm:$0xff] }
   0x2   :  { %v4610_v1 = vld [vmem:[%s6835_s1 + $0x2e4] ss:$16 sps:$4 sm:$0xff]   ;;  %1618 = vmatprep.subr.bf16.mxu0 %v4608_v0  ;;  %v4613_v3 = vld [vmem:[%s6835_s1 + $0x2e0] ss:$16 sps:$4 sm:$0xff]   ;;  %v45_v47 = vld [vmem:[%s6834_s0 + $0x48] sm:$0xff] }
   0x3   :  { %1661 = vmatprep.subr.bf16.mxu1 %v4610_v1  ;;  %v4614_v4 = vld [vmem:[%s6835_s1 + $0xc4] ss:$16 sps:$4 sm:$0xff]   ;;  %1619 = vmatpush1.bf16.msra.mxu0 %v4612_v2  ;;  %v4618_v6 = vld [vmem:[%s6835_s1 + $0xc0] ss:$16 sps:$4 sm:$0xff]   ;;  %v39_v48 = vld [vmem:[%s6834_s0 + $0x18] sm:$0xff]  ;;  %v5326_v53 = vpack.c.bf16 %v45_v47, %v37_v46 }
   0x4   :  { %1662 = vmatpush1.bf16.msra.mxu1 %v4613_v3  ;;  %v4616_v5 = vld [vmem:[%s6835_s1 + $0x2c4] ss:$16 sps:$4 sm:$0xff]   ;;  %1620 = vmatprep.subr.bf16.mxu0 %v4614_v4  ;;  %v4619_v7 = vld [vmem:[%s6835_s1 + $0x2c0] ss:$16 sps:$4 sm:$0xff]   ;;  %v47_v49 = vld [vmem:[%s6834_s0 + $0x58] sm:$0xff] }
   0x5   :  { %1663 = vmatprep.subr.bf16.mxu1 %v4616_v5  ;;  %v4620_v8 = vld [vmem:[%s6835_s1 + $0xa4] ss:$16 sps:$4 sm:$0xff]   ;;  %v4624_v10 = vld [vmem:[%s6835_s1 + $0xa0] ss:$16 sps:$4 sm:$0xff]   ;;  %v5328_v54 = vpack.c.bf16 %v47_v49, %v39_v48  ;;  %1650 = vmatprep.mubr.bf16.mxu0 %v5326_v53  ;;  %v51_v46 = vld [vmem:[%s6834_s0 + $0x78] sm:$0xff] }
   0x6   :  { %v4622_v9 = vld [vmem:[%s6835_s1 + $0x2a4] ss:$16 sps:$4 sm:$0xff]   ;;  %v4625_v11 = vld [vmem:[%s6835_s1 + $0x2a0] ss:$16 sps:$4 sm:$0xff]  }
   0x7   :  { %1621 = vmatpush1.bf16.msra.mxu0 %v4618_v6  ;;  %v4626_v12 = vld [vmem:[%s6835_s1 + $0x84] ss:$16 sps:$4 sm:$0xff]   ;;  %v4630_v14 = vld [vmem:[%s6835_s1 + $0x80] ss:$16 sps:$4 sm:$0xff]   ;;  %1693 = vmatprep.mubr.bf16.mxu1 %v5328_v54 }
   0x8   :  { %1664 = vmatpush1.bf16.msra.mxu1 %v4619_v7  ;;  %1622 = vmatprep.subr.bf16.mxu0 %v4620_v8  ;;  %v4628_v13 = vld [vmem:[%s6835_s1 + $0x284] ss:$16 sps:$4 sm:$0xff]   ;;  %v4631_v15 = vld [vmem:[%s6835_s1 + $0x280] ss:$16 sps:$4 sm:$0xff]  }
   0x9   :  { %1665 = vmatprep.subr.bf16.mxu1 %v4622_v9  ;;  %v4632_v16 = vld [vmem:[%s6835_s1 + $0x64] ss:$16 sps:$4 sm:$0xff]   ;;  %v4636_v18 = vld [vmem:[%s6835_s1 + $0x60] ss:$16 sps:$4 sm:$0xff]  }
   0xa   :  { %v4634_v17 = vld [vmem:[%s6835_s1 + $0x264] ss:$16 sps:$4 sm:$0xff]   ;;  %v4637_v19 = vld [vmem:[%s6835_s1 + $0x260] ss:$16 sps:$4 sm:$0xff]  }
   0xb   :  { %1623 = vmatpush1.bf16.msra.mxu0 %v4624_v10  ;;  %v4638_v20 = vld [vmem:[%s6835_s1 + $0x44] ss:$16 sps:$4 sm:$0xff]   ;;  %v4642_v22 = vld [vmem:[%s6835_s1 + $0x40] ss:$16 sps:$4 sm:$0xff]  }
   0xc   :  { %1666 = vmatpush1.bf16.msra.mxu1 %v4625_v11  ;;  %1624 = vmatprep.subr.bf16.mxu0 %v4626_v12  ;;  %v4640_v21 = vld [vmem:[%s6835_s1 + $0x244] ss:$16 sps:$4 sm:$0xff]   ;;  %v4643_v23 = vld [vmem:[%s6835_s1 + $0x240] ss:$16 sps:$4 sm:$0xff]  }
   0xd   :  { %1667 = vmatprep.subr.bf16.mxu1 %v4628_v13  ;;  %v4644_v24 = vld [vmem:[%s6835_s1 + $0x24] ss:$16 sps:$4 sm:$0xff]   ;;  %v4648_v26 = vld [vmem:[%s6835_s1 + $0x20] ss:$16 sps:$4 sm:$0xff]  }
   0xe   :  { %v4646_v25 = vld [vmem:[%s6835_s1 + $0x224] ss:$16 sps:$4 sm:$0xff]   ;;  %v4649_v27 = vld [vmem:[%s6835_s1 + $0x220] ss:$16 sps:$4 sm:$0xff]  }
   0xf   :  { %1625 = vmatpush1.bf16.msra.mxu0 %v4630_v14  ;;  %v4650_v28 = vld [vmem:[%s6835_s1 + $0x4] ss:$16 sps:$4 sm:$0xff]   ;;  %v4654_v30 = vld [vmem:[%s6835_s1] ss:$16 sps:$4 sm:$0xff]  }
  0x10   :  { %1668 = vmatpush1.bf16.msra.mxu1 %v4631_v15  ;;  %1626 = vmatprep.subr.bf16.mxu0 %v4632_v16  ;;  %v4652_v29 = vld [vmem:[%s6835_s1 + $0x204] ss:$16 sps:$4 sm:$0xff]   ;;  %v4655_v31 = vld [vmem:[%s6835_s1 + $0x200] ss:$16 sps:$4 sm:$0xff]  }
  0x11   :  { %1669 = vmatprep.subr.bf16.mxu1 %v4634_v17  ;;  %v4656_v32 = vld [vmem:[%s6835_s1 + $0x1e4] ss:$16 sps:$4 sm:$0xff]   ;;  %v4660_v34 = vld [vmem:[%s6835_s1 + $0x1e0] ss:$16 sps:$4 sm:$0xff]  }
  0x12   :  { %v4658_v33 = vld [vmem:[%s6835_s1 + $0x3e4] ss:$16 sps:$4 sm:$0xff]   ;;  %v4661_v35 = vld [vmem:[%s6835_s1 + $0x3e0] ss:$16 sps:$4 sm:$0xff]  }
  0x13   :  { %1627 = vmatpush1.bf16.msra.mxu0 %v4636_v18  ;;  %v4662_v36 = vld [vmem:[%s6835_s1 + $0x1c4] ss:$16 sps:$4 sm:$0xff]   ;;  %v4666_v38 = vld [vmem:[%s6835_s1 + $0x1c0] ss:$16 sps:$4 sm:$0xff]  }
  0x14   :  { %1670 = vmatpush1.bf16.msra.mxu1 %v4637_v19  ;;  %1628 = vmatprep.subr.bf16.mxu0 %v4638_v20  ;;  %v4664_v37 = vld [vmem:[%s6835_s1 + $0x3c4] ss:$16 sps:$4 sm:$0xff]   ;;  %v4667_v39 = vld [vmem:[%s6835_s1 + $0x3c0] ss:$16 sps:$4 sm:$0xff]  }
  0x15   :  { %1671 = vmatprep.subr.bf16.mxu1 %v4640_v21  ;;  %v4668_v40 = vld [vmem:[%s6835_s1 + $0x1a4] ss:$16 sps:$4 sm:$0xff]   ;;  %v4672_v42 = vld [vmem:[%s6835_s1 + $0x1a0] ss:$16 sps:$4 sm:$0xff]  }
  0x16   :  { %v4670_v41 = vld [vmem:[%s6835_s1 + $0x3a4] ss:$16 sps:$4 sm:$0xff]   ;;  %v4673_v43 = vld [vmem:[%s6835_s1 + $0x3a0] ss:$16 sps:$4 sm:$0xff]  }
  0x17   :  { %1629 = vmatpush1.bf16.msra.mxu0 %v4642_v22  ;;  %v4674_v44 = vld [vmem:[%s6835_s1 + $0x184] ss:$16 sps:$4 sm:$0xff]   ;;  %v4678_v50 = vld [vmem:[%s6835_s1 + $0x180] ss:$16 sps:$4 sm:$0xff]  }
  0x18   :  { %1672 = vmatpush1.bf16.msra.mxu1 %v4643_v23  ;;  %1630 = vmatprep.subr.bf16.mxu0 %v4644_v24  ;;  %v4676_v45 = vld [vmem:[%s6835_s1 + $0x384] ss:$16 sps:$4 sm:$0xff]   ;;  %v4679_v51 = vld [vmem:[%s6835_s1 + $0x380] ss:$16 sps:$4 sm:$0xff]  }
  0x19   :  { %1673 = vmatprep.subr.bf16.mxu1 %v4646_v25  ;;  %v4680_v52 = vld [vmem:[%s6835_s1 + $0x164] ss:$16 sps:$4 sm:$0xff]   ;;  %v4684_v56 = vld [vmem:[%s6835_s1 + $0x160] ss:$16 sps:$4 sm:$0xff]  }
  0x1a   :  { %v4682_v55 = vld [vmem:[%s6835_s1 + $0x364] ss:$16 sps:$4 sm:$0xff]   ;;  %v4685_v57 = vld [vmem:[%s6835_s1 + $0x360] ss:$16 sps:$4 sm:$0xff]  }
  0x1b   :  { %1631 = vmatpush1.bf16.msra.mxu0 %v4648_v26  ;;  %v4686_v58 = vld [vmem:[%s6835_s1 + $0x144] ss:$16 sps:$4 sm:$0xff]   ;;  %v4690_v60 = vld [vmem:[%s6835_s1 + $0x140] ss:$16 sps:$4 sm:$0xff]  }
  0x1c   :  { %1674 = vmatpush1.bf16.msra.mxu1 %v4649_v27  ;;  %1632 = vmatprep.subr.bf16.mxu0 %v4650_v28  ;;  %v4688_v59 = vld [vmem:[%s6835_s1 + $0x344] ss:$16 sps:$4 sm:$0xff]   ;;  %v4691_v61 = vld [vmem:[%s6835_s1 + $0x340] ss:$16 sps:$4 sm:$0xff]  }
  0x1d   :  { %1675 = vmatprep.subr.bf16.mxu1 %v4652_v29  ;;  %v4692_v62 = vld [vmem:[%s6835_s1 + $0x124] ss:$16 sps:$4 sm:$0xff]   ;;  %v4696_v0 = vld [vmem:[%s6835_s1 + $0x120] ss:$16 sps:$4 sm:$0xff]  }
  0x1e   :  { %v4694_v63 = vld [vmem:[%s6835_s1 + $0x324] ss:$16 sps:$4 sm:$0xff]   ;;  %v4697_v1 = vld [vmem:[%s6835_s1 + $0x320] ss:$16 sps:$4 sm:$0xff]  }
  0x1f   :  { %1633 = vmatpush1.bf16.msra.mxu0 %v4654_v30  ;;  %v4698_v2 = vld [vmem:[%s6835_s1 + $0x104] ss:$16 sps:$4 sm:$0xff]   ;;  %v4702_v4 = vld [vmem:[%s6835_s1 + $0x100] ss:$16 sps:$4 sm:$0xff]  }
  0x20   :  { %1676 = vmatpush1.bf16.msra.mxu1 %v4655_v31  ;;  %1634 = vmatprep.subr.bf16.mxu0 %v4656_v32  ;;  %v4700_v3 = vld [vmem:[%s6835_s1 + $0x304] ss:$16 sps:$4 sm:$0xff]   ;;  %v4703_v5 = vld [vmem:[%s6835_s1 + $0x300] ss:$16 sps:$4 sm:$0xff]  }
  0x21   :  { %1677 = vmatprep.subr.bf16.mxu1 %v4658_v33  ;;  %v36_v6 = vld [vmem:[%s6834_s0] sm:$0xff]  ;;  %v38_v8 = vld [vmem:[%s6834_s0 + $0x10] sm:$0xff] }
  0x22   :  { %v44_v7 = vld [vmem:[%s6834_s0 + $0x40] sm:$0xff]  ;;  %v46_v9 = vld [vmem:[%s6834_s0 + $0x50] sm:$0xff] }
  0x23   :  { %1635 = vmatpush2.bf16.msra.mxu0 %v4660_v34  ;;  %v4706_v10 = vld [vmem:[%s6835_s1 + $0x4e4] ss:$16 sps:$4 sm:$0xff]   ;;  %v5395_v12 = vpack.c.bf16 %v44_v7, %v36_v6  ;;  %v5397_v13 = vpack.c.bf16 %v46_v9, %v38_v8  ;;  %v4704_v14 = vld [vmem:[%s6835_s1 + $0x4e0] ss:$16 sps:$4 sm:$0xff]  }
  0x24   :  { %1678 = vmatpush2.bf16.msra.mxu1 %v4661_v35  ;;  %1636 = vmatprep.subr.bf16.mxu0 %v4662_v36  ;;  %v4709_v11 = vld [vmem:[%s6835_s1 + $0x6e4] ss:$16 sps:$4 sm:$0xff]   ;;  %v4707_v15 = vld [vmem:[%s6835_s1 + $0x6e0] ss:$16 sps:$4 sm:$0xff]  }
  0x25   :  { %1679 = vmatprep.subr.bf16.mxu1 %v4664_v37  ;;  %v4712_v16 = vld [vmem:[%s6835_s1 + $0x4c4] ss:$16 sps:$4 sm:$0xff]   ;;  %v4710_v18 = vld [vmem:[%s6835_s1 + $0x4c0] ss:$16 sps:$4 sm:$0xff]  }
  0x26   :  { %v4715_v17 = vld [vmem:[%s6835_s1 + $0x6c4] ss:$16 sps:$4 sm:$0xff]   ;;  %v4713_v19 = vld [vmem:[%s6835_s1 + $0x6c0] ss:$16 sps:$4 sm:$0xff]  }
  0x27   :  { %1637 = vmatpush2.bf16.msra.mxu0 %v4666_v38  ;;  %v4718_v20 = vld [vmem:[%s6835_s1 + $0x4a4] ss:$16 sps:$4 sm:$0xff]   ;;  %v4716_v22 = vld [vmem:[%s6835_s1 + $0x4a0] ss:$16 sps:$4 sm:$0xff]  }
  0x28   :  { %1680 = vmatpush2.bf16.msra.mxu1 %v4667_v39  ;;  %1638 = vmatprep.subr.bf16.mxu0 %v4668_v40  ;;  %v4721_v21 = vld [vmem:[%s6835_s1 + $0x6a4] ss:$16 sps:$4 sm:$0xff]   ;;  %v4719_v23 = vld [vmem:[%s6835_s1 + $0x6a0] ss:$16 sps:$4 sm:$0xff]   ;;  %v41_v40 = vld [vmem:[%s6834_s0 + $0x28] sm:$0xff] }
  0x29   :  { %1681 = vmatprep.subr.bf16.mxu1 %v4670_v41  ;;  %v4724_v24 = vld [vmem:[%s6835_s1 + $0x484] ss:$16 sps:$4 sm:$0xff]   ;;  %v4722_v26 = vld [vmem:[%s6835_s1 + $0x480] ss:$16 sps:$4 sm:$0xff]   ;;  %v49_v41 = vld [vmem:[%s6834_s0 + $0x68] sm:$0xff] }
  0x2a   :  { %v4727_v25 = vld [vmem:[%s6835_s1 + $0x684] ss:$16 sps:$4 sm:$0xff]   ;;  %v4725_v27 = vld [vmem:[%s6835_s1 + $0x680] ss:$16 sps:$4 sm:$0xff]  }
  0x2b   :  { %1639 = vmatpush2.bf16.msra.mxu0 %v4672_v42  ;;  %v4730_v28 = vld [vmem:[%s6835_s1 + $0x464] ss:$16 sps:$4 sm:$0xff]   ;;  %v4728_v30 = vld [vmem:[%s6835_s1 + $0x460] ss:$16 sps:$4 sm:$0xff]   ;;  %v43_v42 = vld [vmem:[%s6834_s0 + $0x38] sm:$0xff] }
  0x2c   :  { %1682 = vmatpush2.bf16.msra.mxu1 %v4673_v43  ;;  %1640 = vmatprep.subr.bf16.mxu0 %v4674_v44  ;;  %v4733_v29 = vld [vmem:[%s6835_s1 + $0x664] ss:$16 sps:$4 sm:$0xff]   ;;  %v4731_v31 = vld [vmem:[%s6835_s1 + $0x660] ss:$16 sps:$4 sm:$0xff]   ;;  %v5499_v47 = vpack.c.bf16 %v51_v46, %v43_v42  ;;  %v4826_v42 = vld [vmem:[%s6835_s1 + $0x6c] ss:$16 sps:$4 sm:$0xff]  }
  0x2d   :  { %1683 = vmatprep.subr.bf16.mxu1 %v4676_v45  ;;  %v4736_v32 = vld [vmem:[%s6835_s1 + $0x444] ss:$16 sps:$4 sm:$0xff]   ;;  %v4734_v34 = vld [vmem:[%s6835_s1 + $0x440] ss:$16 sps:$4 sm:$0xff]   ;;  %v5494_v45 = vpack.c.bf16 %v49_v41, %v41_v40  ;;  %v4820_v40 = vld [vmem:[%s6835_s1 + $0x8c] ss:$16 sps:$4 sm:$0xff]  }
  0x2e   :  { %v4739_v33 = vld [vmem:[%s6835_s1 + $0x644] ss:$16 sps:$4 sm:$0xff]   ;;  %v4737_v35 = vld [vmem:[%s6835_s1 + $0x640] ss:$16 sps:$4 sm:$0xff]   ;;  %v4821_v41 = vld [vmem:[%s6835_s1 + $0x288] ss:$16 sps:$4 sm:$0xff]  }
  0x2f   :  { %1641 = vmatpush2.bf16.msra.mxu0 %v4678_v50  ;;  %v4742_v36 = vld [vmem:[%s6835_s1 + $0x424] ss:$16 sps:$4 sm:$0xff]   ;;  %v4740_v38 = vld [vmem:[%s6835_s1 + $0x420] ss:$16 sps:$4 sm:$0xff]   ;;  %v4827_v46 = vld [vmem:[%s6835_s1 + $0x268] ss:$16 sps:$4 sm:$0xff]  }
  0x30   :  { %1684 = vmatpush2.bf16.msra.mxu1 %v4679_v51  ;;  %1642 = vmatprep.subr.bf16.mxu0 %v4680_v52  ;;  %v4745_v37 = vld [vmem:[%s6835_s1 + $0x624] ss:$16 sps:$4 sm:$0xff]   ;;  %v4743_v39 = vld [vmem:[%s6835_s1 + $0x620] ss:$16 sps:$4 sm:$0xff]  }
  0x31   :  { %1685 = vmatprep.subr.bf16.mxu1 %v4682_v55  ;;  %v4748_v43 = vld [vmem:[%s6835_s1 + $0x404] ss:$16 sps:$4 sm:$0xff]   ;;  %v4746_v48 = vld [vmem:[%s6835_s1 + $0x400] ss:$16 sps:$4 sm:$0xff]  }
  0x32   :  { %v4751_v44 = vld [vmem:[%s6835_s1 + $0x604] ss:$16 sps:$4 sm:$0xff]   ;;  %v4749_v49 = vld [vmem:[%s6835_s1 + $0x600] ss:$16 sps:$4 sm:$0xff]  }
  0x33   :  { %1643 = vmatpush2.bf16.msra.mxu0 %v4684_v56  ;;  %v4754_v50 = vld [vmem:[%s6835_s1 + $0x5e4] ss:$16 sps:$4 sm:$0xff]   ;;  %v4752_v52 = vld [vmem:[%s6835_s1 + $0x5e0] ss:$16 sps:$4 sm:$0xff]  }
  0x34   :  { %1686 = vmatpush2.bf16.msra.mxu1 %v4685_v57  ;;  %1644 = vmatprep.subr.bf16.mxu0 %v4686_v58  ;;  %v4757_v51 = vld [vmem:[%s6835_s1 + $0x7e4] ss:$16 sps:$4 sm:$0xff]   ;;  %v4755_v55 = vld [vmem:[%s6835_s1 + $0x7e0] ss:$16 sps:$4 sm:$0xff]  }
  0x35   :  { %1687 = vmatprep.subr.bf16.mxu1 %v4688_v59  ;;  %v4760_v56 = vld [vmem:[%s6835_s1 + $0x5c4] ss:$16 sps:$4 sm:$0xff]   ;;  %v4758_v58 = vld [vmem:[%s6835_s1 + $0x5c0] ss:$16 sps:$4 sm:$0xff]  }
  0x36   :  { %v4763_v57 = vld [vmem:[%s6835_s1 + $0x7c4] ss:$16 sps:$4 sm:$0xff]   ;;  %v4761_v59 = vld [vmem:[%s6835_s1 + $0x7c0] ss:$16 sps:$4 sm:$0xff]  }
  0x37   :  { %1645 = vmatpush2.bf16.msra.mxu0 %v4690_v60  ;;  %v4766_v60 = vld [vmem:[%s6835_s1 + $0x5a4] ss:$16 sps:$4 sm:$0xff]   ;;  %v4776_v6 = vld [vmem:[%s6835_s1 + $0x560] ss:$16 sps:$4 sm:$0xff]  }
  0x38   :  { %1688 = vmatpush2.bf16.msra.mxu1 %v4691_v61  ;;  %1646 = vmatprep.subr.bf16.mxu0 %v4692_v62  ;;  %v4769_v61 = vld [vmem:[%s6835_s1 + $0x7a4] ss:$16 sps:$4 sm:$0xff]   ;;  %v4764_v62 = vld [vmem:[%s6835_s1 + $0x5a0] ss:$16 sps:$4 sm:$0xff]  }
  0x39   :  { %1689 = vmatprep.subr.bf16.mxu1 %v4694_v63  ;;  %v4767_v63 = vld [vmem:[%s6835_s1 + $0x7a0] ss:$16 sps:$4 sm:$0xff]   ;;  %v4784_v8 = vld [vmem:[%s6835_s1 + $0x544] ss:$16 sps:$4 sm:$0xff]  }
  0x3a   :  { %v4779_v7 = vld [vmem:[%s6835_s1 + $0x760] ss:$16 sps:$4 sm:$0xff]   ;;  %v4787_v9 = vld [vmem:[%s6835_s1 + $0x744] ss:$16 sps:$4 sm:$0xff]  }
  0x3b   :  { %1647 = vmatpush2.bf16.msra.mxu0 %v4696_v0  ;;  %v4772_v0 = vld [vmem:[%s6835_s1 + $0x584] ss:$16 sps:$4 sm:$0xff]  }
  0x3c   :  { %1690 = vmatpush2.bf16.msra.mxu1 %v4697_v1  ;;  %1648 = vmatprep.subr.bf16.mxu0 %v4698_v2  ;;  %v4775_v1 = vld [vmem:[%s6835_s1 + $0x784] ss:$16 sps:$4 sm:$0xff]   ;;  %v4770_v2 = vld [vmem:[%s6835_s1 + $0x580] ss:$16 sps:$4 sm:$0xff]  }
  0x3d   :  { %1691 = vmatprep.subr.bf16.mxu1 %v4700_v3  ;;  %v4773_v3 = vld [vmem:[%s6835_s1 + $0x780] ss:$16 sps:$4 sm:$0xff]  }
  0x3f   :  { %1649 = vmatpush2.bf16.msra.mxu0 %v4702_v4  ;;  %v4778_v4 = vld [vmem:[%s6835_s1 + $0x564] ss:$16 sps:$4 sm:$0xff]  }
  0x40   :  { %1692 = vmatpush2.bf16.msra.mxu1 %v4703_v5  ;;  %1704 = vmatprep.subr.bf16.mxu0 %v4706_v10  ;;  %v4781_v5 = vld [vmem:[%s6835_s1 + $0x764] ss:$16 sps:$4 sm:$0xff]   ;;  %v4782_v10 = vld [vmem:[%s6835_s1 + $0x540] ss:$16 sps:$4 sm:$0xff]  }
  0x41   :  { %1747 = vmatprep.subr.bf16.mxu1 %v4709_v11  ;;  %v4785_v11 = vld [vmem:[%s6835_s1 + $0x740] ss:$16 sps:$4 sm:$0xff]  }
  0x42   :  { %1651 = vmatmul.mubr.bf16.vlgmr.msra.gmra.mxu0 %v5395_v12 }
  0x43   :  { %1694 = vmatmul.mubr.bf16.vlgmr.msra.gmra.mxu1 %v5397_v13  ;;  %1705 = vmatpush1.bf16.msra.mxu0 %v4704_v14  ;;  %v4790_v14 = vld [vmem:[%s6835_s1 + $0x524] ss:$16 sps:$4 sm:$0xff]  }
  0x44   :  { %1748 = vmatpush1.bf16.msra.mxu1 %v4707_v15  ;;  %1706 = vmatprep.subr.bf16.mxu0 %v4712_v16  ;;  %v4793_v15 = vld [vmem:[%s6835_s1 + $0x724] ss:$16 sps:$4 sm:$0xff]   ;;  %v4788_v16 = vld [vmem:[%s6835_s1 + $0x520] ss:$16 sps:$4 sm:$0xff]  }
  0x45   :  { %1749 = vmatprep.subr.bf16.mxu1 %v4715_v17  ;;  %1736 = vmatprep.mubr.bf16.mxu0 %v5494_v45  ;;  %v4791_v17 = vld [vmem:[%s6835_s1 + $0x720] ss:$16 sps:$4 sm:$0xff]  }
  0x46   :  { %1779 = vmatprep.mubr.bf16.mxu1 %v5499_v47 }
  0x47   :  { %1707 = vmatpush1.bf16.msra.mxu0 %v4710_v18  ;;  %v4796_v18 = vld [vmem:[%s6835_s1 + $0x504] ss:$16 sps:$4 sm:$0xff]  }
  0x48   :  { %1750 = vmatpush1.bf16.msra.mxu1 %v4713_v19  ;;  %1708 = vmatprep.subr.bf16.mxu0 %v4718_v20  ;;  %v4799_v19 = vld [vmem:[%s6835_s1 + $0x704] ss:$16 sps:$4 sm:$0xff]   ;;  %v4794_v20 = vld [vmem:[%s6835_s1 + $0x500] ss:$16 sps:$4 sm:$0xff]  }
  0x49   :  { %1751 = vmatprep.subr.bf16.mxu1 %v4721_v21  ;;  %v4797_v21 = vld [vmem:[%s6835_s1 + $0x700] ss:$16 sps:$4 sm:$0xff]  }
  0x4b   :  { %1709 = vmatpush1.bf16.msra.mxu0 %v4716_v22  ;;  %v40_v22 = vld [vmem:[%s6834_s0 + $0x20] sm:$0xff] }
  0x4c   :  { %1752 = vmatpush1.bf16.msra.mxu1 %v4719_v23  ;;  %1710 = vmatprep.subr.bf16.mxu0 %v4724_v24  ;;  %v48_v23 = vld [vmem:[%s6834_s0 + $0x60] sm:$0xff]  ;;  %v42_v24 = vld [vmem:[%s6834_s0 + $0x30] sm:$0xff] }
  0x4d   :  { %1753 = vmatprep.subr.bf16.mxu1 %v4727_v25  ;;  %v50_v25 = vld [vmem:[%s6834_s0 + $0x70] sm:$0xff] }
  0x4f   :  { %1711 = vmatpush1.bf16.msra.mxu0 %v4722_v26  ;;  %v4802_v26 = vld [vmem:[%s6835_s1 + $0xec] ss:$16 sps:$4 sm:$0xff]  }
  0x50   :  { %1754 = vmatpush1.bf16.msra.mxu1 %v4725_v27  ;;  %1712 = vmatprep.subr.bf16.mxu0 %v4730_v28  ;;  %v4805_v27 = vld [vmem:[%s6835_s1 + $0x2ec] ss:$16 sps:$4 sm:$0xff]   ;;  %v5623_v28 = vpack.c.bf16 %v48_v23, %v40_v22  ;;  %v4878_v22 = vld [vmem:[%s6835_s1 + $0x148] ss:$16 sps:$4 sm:$0xff]  }
  0x51   :  { %1755 = vmatprep.subr.bf16.mxu1 %v4733_v29  ;;  %v5625_v29 = vpack.c.bf16 %v50_v25, %v42_v24  ;;  %v4881_v23 = vld [vmem:[%s6835_s1 + $0x348] ss:$16 sps:$4 sm:$0xff]   ;;  %v4886_v24 = vld [vmem:[%s6835_s1 + $0x12c] ss:$16 sps:$4 sm:$0xff]  }
  0x52   :  { %v4889_v25 = vld [vmem:[%s6835_s1 + $0x32c] ss:$16 sps:$4 sm:$0xff]  }
  0x53   :  { %1713 = vmatpush1.bf16.msra.mxu0 %v4728_v30  ;;  %v4800_v30 = vld [vmem:[%s6835_s1 + $0xe8] ss:$16 sps:$4 sm:$0xff]  }
  0x54   :  { %1756 = vmatpush1.bf16.msra.mxu1 %v4731_v31  ;;  %1714 = vmatprep.subr.bf16.mxu0 %v4736_v32  ;;  %v4803_v31 = vld [vmem:[%s6835_s1 + $0x2e8] ss:$16 sps:$4 sm:$0xff]   ;;  %v4808_v32 = vld [vmem:[%s6835_s1 + $0xcc] ss:$16 sps:$4 sm:$0xff]  }
  0x55   :  { %1757 = vmatprep.subr.bf16.mxu1 %v4739_v33  ;;  %v4811_v33 = vld [vmem:[%s6835_s1 + $0x2cc] ss:$16 sps:$4 sm:$0xff]  }
  0x57   :  { %1715 = vmatpush1.bf16.msra.mxu0 %v4734_v34  ;;  %v4806_v34 = vld [vmem:[%s6835_s1 + $0xc8] ss:$16 sps:$4 sm:$0xff]  }
  0x58   :  { %1758 = vmatpush1.bf16.msra.mxu1 %v4737_v35  ;;  %1716 = vmatprep.subr.bf16.mxu0 %v4742_v36  ;;  %v4809_v35 = vld [vmem:[%s6835_s1 + $0x2c8] ss:$16 sps:$4 sm:$0xff]   ;;  %v4814_v36 = vld [vmem:[%s6835_s1 + $0xac] ss:$16 sps:$4 sm:$0xff]  }
  0x59   :  { %1759 = vmatprep.subr.bf16.mxu1 %v4745_v37  ;;  %v4817_v37 = vld [vmem:[%s6835_s1 + $0x2ac] ss:$16 sps:$4 sm:$0xff]  }
  0x5b   :  { %1717 = vmatpush1.bf16.msra.mxu0 %v4740_v38  ;;  %v4812_v38 = vld [vmem:[%s6835_s1 + $0xa8] ss:$16 sps:$4 sm:$0xff]  }
  0x5c   :  { %1760 = vmatpush1.bf16.msra.mxu1 %v4743_v39  ;;  %1718 = vmatprep.subr.bf16.mxu0 %v4748_v43  ;;  %v4815_v39 = vld [vmem:[%s6835_s1 + $0x2a8] ss:$16 sps:$4 sm:$0xff]   ;;  %v4829_v43 = vld [vmem:[%s6835_s1 + $0x26c] ss:$16 sps:$4 sm:$0xff]  }
  0x5d   :  { %1761 = vmatprep.subr.bf16.mxu1 %v4751_v44  ;;  %v4824_v44 = vld [vmem:[%s6835_s1 + $0x68] ss:$16 sps:$4 sm:$0xff]  }
  0x5f   :  { %1719 = vmatpush1.bf16.msra.mxu0 %v4746_v48  ;;  %v4832_v48 = vld [vmem:[%s6835_s1 + $0x4c] ss:$16 sps:$4 sm:$0xff]  }
  0x60   :  { %1762 = vmatpush1.bf16.msra.mxu1 %v4749_v49  ;;  %1720 = vmatprep.subr.bf16.mxu0 %v4754_v50  ;;  %v4835_v49 = vld [vmem:[%s6835_s1 + $0x24c] ss:$16 sps:$4 sm:$0xff]   ;;  %v4830_v50 = vld [vmem:[%s6835_s1 + $0x48] ss:$16 sps:$4 sm:$0xff]  }
  0x61   :  { %1763 = vmatprep.subr.bf16.mxu1 %v4757_v51  ;;  %v4833_v51 = vld [vmem:[%s6835_s1 + $0x248] ss:$16 sps:$4 sm:$0xff]  }
  0x63   :  { %1721 = vmatpush2.bf16.msra.mxu0 %v4752_v52  ;;  %v4838_v52 = vld [vmem:[%s6835_s1 + $0x2c] ss:$16 sps:$4 sm:$0xff]  }
  0x64   :  { %1764 = vmatpush2.bf16.msra.mxu1 %v4755_v55  ;;  %1722 = vmatprep.subr.bf16.mxu0 %v4760_v56  ;;  %v4841_v55 = vld [vmem:[%s6835_s1 + $0x22c] ss:$16 sps:$4 sm:$0xff]   ;;  %v4836_v56 = vld [vmem:[%s6835_s1 + $0x28] ss:$16 sps:$4 sm:$0xff]  }
  0x65   :  { %1765 = vmatprep.subr.bf16.mxu1 %v4763_v57  ;;  %v4839_v57 = vld [vmem:[%s6835_s1 + $0x228] ss:$16 sps:$4 sm:$0xff]  }
  0x67   :  { %1723 = vmatpush2.bf16.msra.mxu0 %v4758_v58  ;;  %v4844_v58 = vld [vmem:[%s6835_s1 + $0xc] ss:$16 sps:$4 sm:$0xff]  }
  0x68   :  { %1766 = vmatpush2.bf16.msra.mxu1 %v4761_v59  ;;  %1724 = vmatprep.subr.bf16.mxu0 %v4766_v60  ;;  %v4847_v59 = vld [vmem:[%s6835_s1 + $0x20c] ss:$16 sps:$4 sm:$0xff]   ;;  %v4842_v60 = vld [vmem:[%s6835_s1 + $0x8] ss:$16 sps:$4 sm:$0xff]  }
  0x69   :  { %1767 = vmatprep.subr.bf16.mxu1 %v4769_v61  ;;  %v4845_v61 = vld [vmem:[%s6835_s1 + $0x208] ss:$16 sps:$4 sm:$0xff]  }
  0x6b   :  { %1725 = vmatpush2.bf16.msra.mxu0 %v4764_v62  ;;  %v4850_v62 = vld [vmem:[%s6835_s1 + $0x1ec] ss:$16 sps:$4 sm:$0xff]  }
  0x6c   :  { %1768 = vmatpush2.bf16.msra.mxu1 %v4767_v63  ;;  %1726 = vmatprep.subr.bf16.mxu0 %v4772_v0  ;;  %v4853_v63 = vld [vmem:[%s6835_s1 + $0x3ec] ss:$16 sps:$4 sm:$0xff]   ;;  %v4848_v0 = vld [vmem:[%s6835_s1 + $0x1e8] ss:$16 sps:$4 sm:$0xff]  }
  0x6d   :  { %1769 = vmatprep.subr.bf16.mxu1 %v4775_v1  ;;  %v4851_v1 = vld [vmem:[%s6835_s1 + $0x3e8] ss:$16 sps:$4 sm:$0xff]  }
  0x6f   :  { %1727 = vmatpush2.bf16.msra.mxu0 %v4770_v2  ;;  %v4856_v2 = vld [vmem:[%s6835_s1 + $0x1cc] ss:$16 sps:$4 sm:$0xff]  }
  0x70   :  { %1770 = vmatpush2.bf16.msra.mxu1 %v4773_v3  ;;  %1728 = vmatprep.subr.bf16.mxu0 %v4778_v4  ;;  %v4859_v3 = vld [vmem:[%s6835_s1 + $0x3cc] ss:$16 sps:$4 sm:$0xff]   ;;  %v4854_v4 = vld [vmem:[%s6835_s1 + $0x1c8] ss:$16 sps:$4 sm:$0xff]  }
  0x71   :  { %1771 = vmatprep.subr.bf16.mxu1 %v4781_v5  ;;  %v4857_v5 = vld [vmem:[%s6835_s1 + $0x3c8] ss:$16 sps:$4 sm:$0xff]  }
  0x73   :  { %1729 = vmatpush2.bf16.msra.mxu0 %v4776_v6  ;;  %v4862_v6 = vld [vmem:[%s6835_s1 + $0x1ac] ss:$16 sps:$4 sm:$0xff]  }
  0x74   :  { %1772 = vmatpush2.bf16.msra.mxu1 %v4779_v7  ;;  %1730 = vmatprep.subr.bf16.mxu0 %v4784_v8  ;;  %v4865_v7 = vld [vmem:[%s6835_s1 + $0x3ac] ss:$16 sps:$4 sm:$0xff]   ;;  %v4860_v8 = vld [vmem:[%s6835_s1 + $0x1a8] ss:$16 sps:$4 sm:$0xff]  }
  0x75   :  { %1773 = vmatprep.subr.bf16.mxu1 %v4787_v9  ;;  %v4863_v9 = vld [vmem:[%s6835_s1 + $0x3a8] ss:$16 sps:$4 sm:$0xff]  }
  0x77   :  { %1731 = vmatpush2.bf16.msra.mxu0 %v4782_v10  ;;  %v4868_v10 = vld [vmem:[%s6835_s1 + $0x18c] ss:$16 sps:$4 sm:$0xff]  }
  0x78   :  { %1774 = vmatpush2.bf16.msra.mxu1 %v4785_v11  ;;  %1732 = vmatprep.subr.bf16.mxu0 %v4790_v14  ;;  %v4871_v11 = vld [vmem:[%s6835_s1 + $0x38c] ss:$16 sps:$4 sm:$0xff]   ;;  %v4866_v14 = vld [vmem:[%s6835_s1 + $0x188] ss:$16 sps:$4 sm:$0xff]  }
  0x79   :  { %1775 = vmatprep.subr.bf16.mxu1 %v4793_v15  ;;  %v4869_v15 = vld [vmem:[%s6835_s1 + $0x388] ss:$16 sps:$4 sm:$0xff]  }
  0x7b   :  { %1733 = vmatpush2.bf16.msra.mxu0 %v4788_v16  ;;  %v4874_v16 = vld [vmem:[%s6835_s1 + $0x16c] ss:$16 sps:$4 sm:$0xff]  }
  0x7c   :  { %1776 = vmatpush2.bf16.msra.mxu1 %v4791_v17  ;;  %1734 = vmatprep.subr.bf16.mxu0 %v4796_v18  ;;  %v4877_v17 = vld [vmem:[%s6835_s1 + $0x36c] ss:$16 sps:$4 sm:$0xff]   ;;  %v4872_v18 = vld [vmem:[%s6835_s1 + $0x168] ss:$16 sps:$4 sm:$0xff]  }
  0x7d   :  { %1777 = vmatprep.subr.bf16.mxu1 %v4799_v19  ;;  %v4875_v19 = vld [vmem:[%s6835_s1 + $0x368] ss:$16 sps:$4 sm:$0xff]  }
  0x7f   :  { %1735 = vmatpush2.bf16.msra.mxu0 %v4794_v20  ;;  %v4880_v20 = vld [vmem:[%s6835_s1 + $0x14c] ss:$16 sps:$4 sm:$0xff]  }
  0x80   :  { %1778 = vmatpush2.bf16.msra.mxu1 %v4797_v21  ;;  %1790 = vmatprep.subr.bf16.mxu0 %v4802_v26  ;;  %v4883_v21 = vld [vmem:[%s6835_s1 + $0x34c] ss:$16 sps:$4 sm:$0xff]   ;;  %v4884_v26 = vld [vmem:[%s6835_s1 + $0x128] ss:$16 sps:$4 sm:$0xff]  }
  0x81   :  { %1833 = vmatprep.subr.bf16.mxu1 %v4805_v27  ;;  %v4887_v27 = vld [vmem:[%s6835_s1 + $0x328] ss:$16 sps:$4 sm:$0xff]  }
  0x82   :  { %1737 = vmatmul.mubr.bf16.vlgmr.msra.gmra.mxu0 %v5623_v28 }
  0x83   :  { %1780 = vmatmul.mubr.bf16.vlgmr.msra.gmra.mxu1 %v5625_v29  ;;  %1791 = vmatpush1.bf16.msra.mxu0 %v4800_v30  ;;  %v4892_v30 = vld [vmem:[%s6835_s1 + $0x10c] ss:$16 sps:$4 sm:$0xff]  }
  0x84   :  { %1834 = vmatpush1.bf16.msra.mxu1 %v4803_v31  ;;  %1792 = vmatprep.subr.bf16.mxu0 %v4808_v32  ;;  %v4895_v31 = vld [vmem:[%s6835_s1 + $0x30c] ss:$16 sps:$4 sm:$0xff]   ;;  %v4890_v32 = vld [vmem:[%s6835_s1 + $0x108] ss:$16 sps:$4 sm:$0xff]  }
  0x85   :  { %1835 = vmatprep.subr.bf16.mxu1 %v4811_v33  ;;  %1822 = vmatprep.mubr.bf16.mxu0 %v5326_v53  ;;  %v4823_v53 = vld [vmem:[%s6835_s1 + $0x28c] ss:$16 sps:$4 sm:$0xff]   ;;  %v4893_v33 = vld [vmem:[%s6835_s1 + $0x308] ss:$16 sps:$4 sm:$0xff]  }
  0x86   :  { %1865 = vmatprep.mubr.bf16.mxu1 %v5328_v54  ;;  %v4818_v54 = vld [vmem:[%s6835_s1 + $0x88] ss:$16 sps:$4 sm:$0xff]  }
  0x87   :  { %1793 = vmatpush1.bf16.msra.mxu0 %v4806_v34  ;;  %v4898_v34 = vld [vmem:[%s6835_s1 + $0x4ec] ss:$16 sps:$4 sm:$0xff]  }
  0x88   :  { %1836 = vmatpush1.bf16.msra.mxu1 %v4809_v35  ;;  %1794 = vmatprep.subr.bf16.mxu0 %v4814_v36  ;;  %v4901_v35 = vld [vmem:[%s6835_s1 + $0x6ec] ss:$16 sps:$4 sm:$0xff]   ;;  %v4896_v36 = vld [vmem:[%s6835_s1 + $0x4e8] ss:$16 sps:$4 sm:$0xff]  }
  0x89   :  { %1837 = vmatprep.subr.bf16.mxu1 %v4817_v37  ;;  %v4899_v37 = vld [vmem:[%s6835_s1 + $0x6e8] ss:$16 sps:$4 sm:$0xff]  }
  0x8b   :  { %1795 = vmatpush1.bf16.msra.mxu0 %v4812_v38  ;;  %v4904_v38 = vld [vmem:[%s6835_s1 + $0x4cc] ss:$16 sps:$4 sm:$0xff]  }
  0x8c   :  { %1838 = vmatpush1.bf16.msra.mxu1 %v4815_v39  ;;  %1796 = vmatprep.subr.bf16.mxu0 %v4820_v40  ;;  %v4907_v39 = vld [vmem:[%s6835_s1 + $0x6cc] ss:$16 sps:$4 sm:$0xff]  }
  0x8d   :  { %1839 = vmatprep.subr.bf16.mxu1 %v4823_v53 }
  0x8f   :  { %1797 = vmatpush1.bf16.msra.mxu0 %v4818_v54 }
  0x90   :  { %1840 = vmatpush1.bf16.msra.mxu1 %v4821_v41  ;;  %1798 = vmatprep.subr.bf16.mxu0 %v4826_v42 }
  0x91   :  { %1841 = vmatprep.subr.bf16.mxu1 %v4829_v43 }
  0x93   :  { %1799 = vmatpush1.bf16.msra.mxu0 %v4824_v44 }
  0x94   :  { %1842 = vmatpush1.bf16.msra.mxu1 %v4827_v46  ;;  %1800 = vmatprep.subr.bf16.mxu0 %v4832_v48 }
  0x95   :  { %1843 = vmatprep.subr.bf16.mxu1 %v4835_v49 }
  0x97   :  { %1801 = vmatpush1.bf16.msra.mxu0 %v4830_v50 }
  0x98   :  { %1844 = vmatpush1.bf16.msra.mxu1 %v4833_v51  ;;  %1802 = vmatprep.subr.bf16.mxu0 %v4838_v52 }
  0x99   :  { %1845 = vmatprep.subr.bf16.mxu1 %v4841_v55 }
  0x9b   :  { %1803 = vmatpush1.bf16.msra.mxu0 %v4836_v56 }
  0x9c   :  { %1846 = vmatpush1.bf16.msra.mxu1 %v4839_v57  ;;  %1804 = vmatprep.subr.bf16.mxu0 %v4844_v58 }
  0x9d   :  { %1847 = vmatprep.subr.bf16.mxu1 %v4847_v59 }
  0x9f   :  { %1805 = vmatpush1.bf16.msra.mxu0 %v4842_v60 }
  0xa0   :  { %1848 = vmatpush1.bf16.msra.mxu1 %v4845_v61  ;;  %1806 = vmatprep.subr.bf16.mxu0 %v4850_v62 }
  0xa1   :  { %1849 = vmatprep.subr.bf16.mxu1 %v4853_v63 }
  0xa3   :  { %1807 = vmatpush2.bf16.msra.mxu0 %v4848_v0 }
  0xa4   :  { %1850 = vmatpush2.bf16.msra.mxu1 %v4851_v1  ;;  %1808 = vmatprep.subr.bf16.mxu0 %v4856_v2 }
  0xa5   :  { %1851 = vmatprep.subr.bf16.mxu1 %v4859_v3 }
  0xa7   :  { %1809 = vmatpush2.bf16.msra.mxu0 %v4854_v4 }
  0xa8   :  { %1852 = vmatpush2.bf16.msra.mxu1 %v4857_v5  ;;  %1810 = vmatprep.subr.bf16.mxu0 %v4862_v6 }
  0xa9   :  { %1853 = vmatprep.subr.bf16.mxu1 %v4865_v7 }
  0xab   :  { %1811 = vmatpush2.bf16.msra.mxu0 %v4860_v8 }
  0xac   :  { %1854 = vmatpush2.bf16.msra.mxu1 %v4863_v9  ;;  %1812 = vmatprep.subr.bf16.mxu0 %v4868_v10 }
  0xad   :  { %1855 = vmatprep.subr.bf16.mxu1 %v4871_v11 }
  0xaf   :  { %1813 = vmatpush2.bf16.msra.mxu0 %v4866_v14 }
  0xb0   :  { %1856 = vmatpush2.bf16.msra.mxu1 %v4869_v15  ;;  %1814 = vmatprep.subr.bf16.mxu0 %v4874_v16 }
  0xb1   :  { %1857 = vmatprep.subr.bf16.mxu1 %v4877_v17 }
  0xb3   :  { %1815 = vmatpush2.bf16.msra.mxu0 %v4872_v18 }
  0xb4   :  { %1858 = vmatpush2.bf16.msra.mxu1 %v4875_v19  ;;  %1816 = vmatprep.subr.bf16.mxu0 %v4880_v20 }
  0xb5   :  { %1859 = vmatprep.subr.bf16.mxu1 %v4883_v21 }
  0xb7   :  { %1817 = vmatpush2.bf16.msra.mxu0 %v4878_v22 }
  0xb8   :  { %1860 = vmatpush2.bf16.msra.mxu1 %v4881_v23  ;;  %1818 = vmatprep.subr.bf16.mxu0 %v4886_v24 }
  0xb9   :  { %1861 = vmatprep.subr.bf16.mxu1 %v4889_v25 }
  0xbb   :  { %1819 = vmatpush2.bf16.msra.mxu0 %v4884_v26 }
  0xbc   :  { %1862 = vmatpush2.bf16.msra.mxu1 %v4887_v27  ;;  %1820 = vmatprep.subr.bf16.mxu0 %v4892_v30 }
  0xbd   :  { %1863 = vmatprep.subr.bf16.mxu1 %v4895_v31 }
  0xbf   :  { %1821 = vmatpush2.bf16.msra.mxu0 %v4890_v32 }
  0xc0   :  { %1864 = vmatpush2.bf16.msra.mxu1 %v4893_v33  ;;  %1876 = vmatprep.subr.bf16.mxu0 %v4898_v34 }
  0xc1   :  { %1919 = vmatprep.subr.bf16.mxu1 %v4901_v35 }
  0xc2   :  { %16 = vsyncpa [#allocation3], 0  ;;  %1823 = vmatmul.mubr.bf16.vlgmr.msra.gmra.mxu0 %v5395_v12  ;;  %v4902_v40 = vld [vmem:[%s6835_s1 + $0x4c8] ss:$16 sps:$4 sm:$0xff]   ;;  %v4910_v54 = vld [vmem:[%s6835_s1 + $0x4ac] ss:$16 sps:$4 sm:$0xff]  }
  0xc3   :  { %1866 = vmatmul.mubr.bf16.vlgmr.msra.gmra.mxu1 %v5397_v13  ;;  %1877 = vmatpush1.bf16.msra.mxu0 %v4896_v36  ;;  %v4905_v53 = vld [vmem:[%s6835_s1 + $0x6c8] ss:$16 sps:$4 sm:$0xff]   ;;  %v4913_v12 = vld [vmem:[%s6835_s1 + $0x6ac] ss:$16 sps:$4 sm:$0xff]   ;;  %vm2181_vm0 = vcmask 130048   ;;  %vm4051_vm1 = vcmask 15360  }
  0xc4   :  { %1920 = vmatpush1.bf16.msra.mxu1 %v4899_v37  ;;  %1878 = vmatprep.subr.bf16.mxu0 %v4904_v38  ;;  %v4908_v13 = vld [vmem:[%s6835_s1 + $0x4a8] ss:$16 sps:$4 sm:$0xff]   ;;  %v4916_v42 = vld [vmem:[%s6835_s1 + $0x48c] ss:$16 sps:$4 sm:$0xff]   ;;  %v4994_v38 = vld [vmem:[%s6837_s3 + $0x70] sm:$0xff]  }
  0xc5   :  { %1921 = vmatprep.subr.bf16.mxu1 %v4907_v39  ;;  %1908 = vmatprep.mubr.bf16.mxu0 %v5494_v45  ;;  %v4911_v41 = vld [vmem:[%s6835_s1 + $0x6a8] ss:$16 sps:$4 sm:$0xff]   ;;  %v4919_v45 = vld [vmem:[%s6835_s1 + $0x68c] ss:$16 sps:$4 sm:$0xff]   ;;  %v4995_v39 = vld [vmem:[%s6837_s3 + $0x30] sm:$0xff]  }
  0xc6   :  { %1951 = vmatprep.mubr.bf16.mxu1 %v5499_v47  ;;  %v4914_v47 = vld [vmem:[%s6835_s1 + $0x488] ss:$16 sps:$4 sm:$0xff]   ;;  %v4922_v44 = vld [vmem:[%s6835_s1 + $0x46c] ss:$16 sps:$4 sm:$0xff]  }
  0xc7   :  { %1879 = vmatpush1.bf16.msra.mxu0 %v4902_v40  ;;  %v4917_v43 = vld [vmem:[%s6835_s1 + $0x688] ss:$16 sps:$4 sm:$0xff]   ;;  %v4925_v46 = vld [vmem:[%s6835_s1 + $0x66c] ss:$16 sps:$4 sm:$0xff]  }
  0xc8   :  { %1922 = vmatpush1.bf16.msra.mxu1 %v4905_v53  ;;  %1880 = vmatprep.subr.bf16.mxu0 %v4910_v54  ;;  %v4920_v48 = vld [vmem:[%s6835_s1 + $0x468] ss:$16 sps:$4 sm:$0xff]   ;;  %v4928_v50 = vld [vmem:[%s6835_s1 + $0x44c] ss:$16 sps:$4 sm:$0xff]  }
  0xc9   :  { %1923 = vmatprep.subr.bf16.mxu1 %v4913_v12  ;;  %v4923_v49 = vld [vmem:[%s6835_s1 + $0x668] ss:$16 sps:$4 sm:$0xff]   ;;  %v4931_v51 = vld [vmem:[%s6835_s1 + $0x64c] ss:$16 sps:$4 sm:$0xff]  }
  0xca   :  { %v4926_v52 = vld [vmem:[%s6835_s1 + $0x448] ss:$16 sps:$4 sm:$0xff]   ;;  %v4934_v56 = vld [vmem:[%s6835_s1 + $0x42c] ss:$16 sps:$4 sm:$0xff]  }
  0xcb   :  { %1881 = vmatpush1.bf16.msra.mxu0 %v4908_v13  ;;  %v4929_v55 = vld [vmem:[%s6835_s1 + $0x648] ss:$16 sps:$4 sm:$0xff]   ;;  %v4937_v57 = vld [vmem:[%s6835_s1 + $0x62c] ss:$16 sps:$4 sm:$0xff]   ;;  %v5107_v13 = vmov 0  }
  0xcc   :  { %1924 = vmatpush1.bf16.msra.mxu1 %v4911_v41  ;;  %1882 = vmatprep.subr.bf16.mxu0 %v4916_v42  ;;  %v4932_v58 = vld [vmem:[%s6835_s1 + $0x428] ss:$16 sps:$4 sm:$0xff]   ;;  %v4940_v60 = vld [vmem:[%s6835_s1 + $0x40c] ss:$16 sps:$4 sm:$0xff]   ;;  %v5009_v41 = vld [vmem:[%s6837_s3 + $0xb0] sm:$0xff]  }
  0xcd   :  { %1925 = vmatprep.subr.bf16.mxu1 %v4919_v45  ;;  %v4935_v59 = vld [vmem:[%s6835_s1 + $0x628] ss:$16 sps:$4 sm:$0xff]   ;;  %v4943_v61 = vld [vmem:[%s6835_s1 + $0x60c] ss:$16 sps:$4 sm:$0xff]   ;;  %4605 = vset.pattern.permute.xlu0 %v5107_v13  ;;  %v5002_v45 = vld [vmem:[%s6837_s3 + $0x50] sm:$0xff]  }
  0xce   :  { %v4938_v62 = vld [vmem:[%s6835_s1 + $0x408] ss:$16 sps:$4 sm:$0xff]   ;;  %v4946_v0 = vld [vmem:[%s6835_s1 + $0x5ec] ss:$16 sps:$4 sm:$0xff]  }
  0xcf   :  { %1883 = vmatpush1.bf16.msra.mxu0 %v4914_v47  ;;  %v4941_v63 = vld [vmem:[%s6835_s1 + $0x608] ss:$16 sps:$4 sm:$0xff]   ;;  %v4949_v1 = vld [vmem:[%s6835_s1 + $0x7ec] ss:$16 sps:$4 sm:$0xff]   ;;  %v5003_v47 = vld [vmem:[%s6837_s3 + $0x10] sm:$0xff]  }
  0xd0   :  { %1926 = vmatpush1.bf16.msra.mxu1 %v4917_v43  ;;  %1884 = vmatprep.subr.bf16.mxu0 %v4922_v44  ;;  %v4944_v2 = vld [vmem:[%s6835_s1 + $0x5e8] ss:$16 sps:$4 sm:$0xff]   ;;  %v4952_v4 = vld [vmem:[%s6835_s1 + $0x5cc] ss:$16 sps:$4 sm:$0xff]  }
  0xd1   :  { %1927 = vmatprep.subr.bf16.mxu1 %v4925_v46  ;;  %v4947_v3 = vld [vmem:[%s6835_s1 + $0x7e8] ss:$16 sps:$4 sm:$0xff]   ;;  %v4955_v5 = vld [vmem:[%s6835_s1 + $0x7cc] ss:$16 sps:$4 sm:$0xff]   ;;  %v5006_v46 = vld [vmem:[%s6837_s3 + $0x40] sm:$0xff]  }
  0xd2   :  { %v4950_v6 = vld [vmem:[%s6835_s1 + $0x5c8] ss:$16 sps:$4 sm:$0xff]   ;;  %v4958_v8 = vld [vmem:[%s6835_s1 + $0x5ac] ss:$16 sps:$4 sm:$0xff]  }
  0xd3   :  { %1885 = vmatpush1.bf16.msra.mxu0 %v4920_v48  ;;  %v4953_v7 = vld [vmem:[%s6835_s1 + $0x7c8] ss:$16 sps:$4 sm:$0xff]   ;;  %v4961_v9 = vld [vmem:[%s6835_s1 + $0x7ac] ss:$16 sps:$4 sm:$0xff]   ;;  %v5007_v48 = vld [vmem:[%s6837_s3] sm:$0xff]  }
  0xd4   :  { %1928 = vmatpush1.bf16.msra.mxu1 %v4923_v49  ;;  %1886 = vmatprep.subr.bf16.mxu0 %v4928_v50  ;;  %v4956_v10 = vld [vmem:[%s6835_s1 + $0x5a8] ss:$16 sps:$4 sm:$0xff]   ;;  %v4964_v14 = vld [vmem:[%s6835_s1 + $0x58c] ss:$16 sps:$4 sm:$0xff]   ;;  %v318_v49 = vlaneseq }
  0xd5   :  { %1929 = vmatprep.subr.bf16.mxu1 %v4931_v51  ;;  %v4959_v11 = vld [vmem:[%s6835_s1 + $0x7a8] ss:$16 sps:$4 sm:$0xff]   ;;  %v4967_v15 = vld [vmem:[%s6835_s1 + $0x78c] ss:$16 sps:$4 sm:$0xff]  }
  0xd6   :  { %v4962_v16 = vld [vmem:[%s6835_s1 + $0x588] ss:$16 sps:$4 sm:$0xff]   ;;  %v4970_v18 = vld [vmem:[%s6835_s1 + $0x56c] ss:$16 sps:$4 sm:$0xff]   ;;  %v6073_v50 = vshrl.u32 %v318_v49, 7 }
  0xd7   :  { %1887 = vmatpush1.bf16.msra.mxu0 %v4926_v52  ;;  %v4965_v17 = vld [vmem:[%s6835_s1 + $0x788] ss:$16 sps:$4 sm:$0xff]   ;;  %v4973_v19 = vld [vmem:[%s6835_s1 + $0x76c] ss:$16 sps:$4 sm:$0xff]  }
  0xd8   :  { %1930 = vmatpush1.bf16.msra.mxu1 %v4929_v55  ;;  %1888 = vmatprep.subr.bf16.mxu0 %v4934_v56  ;;  %v4968_v20 = vld [vmem:[%s6835_s1 + $0x568] ss:$16 sps:$4 sm:$0xff]   ;;  %v4976_v22 = vld [vmem:[%s6835_s1 + $0x54c] ss:$16 sps:$4 sm:$0xff]   ;;  %v6076_v55 = vsub.s32 1, %v6073_v50 }
  0xd9   :  { %1931 = vmatprep.subr.bf16.mxu1 %v4937_v57  ;;  %v4971_v21 = vld [vmem:[%s6835_s1 + $0x768] ss:$16 sps:$4 sm:$0xff]   ;;  %v4979_v23 = vld [vmem:[%s6835_s1 + $0x74c] ss:$16 sps:$4 sm:$0xff]   ;;  %v6081_v56 = vld [vmem:[%s6836_s2] sm:$0xf] }
  0xda   :  { %v4974_v24 = vld [vmem:[%s6835_s1 + $0x548] ss:$16 sps:$4 sm:$0xff]   ;;  %v4982_v26 = vld [vmem:[%s6835_s1 + $0x52c] ss:$16 sps:$4 sm:$0xff]   ;;  %v6084_v57 = vsub.s32 0, %v6073_v50 }
  0xdb   :  { %1889 = vmatpush1.bf16.msra.mxu0 %v4932_v58  ;;  %v4977_v25 = vld [vmem:[%s6835_s1 + $0x748] ss:$16 sps:$4 sm:$0xff]   ;;  %v4985_v27 = vld [vmem:[%s6835_s1 + $0x72c] ss:$16 sps:$4 sm:$0xff]  }
  0xdc   :  { %1932 = vmatpush1.bf16.msra.mxu1 %v4935_v59  ;;  %1890 = vmatprep.subr.bf16.mxu0 %v4940_v60  ;;  %v4980_v30 = vld [vmem:[%s6835_s1 + $0x528] ss:$16 sps:$4 sm:$0xff]   ;;  %v4988_v32 = vld [vmem:[%s6835_s1 + $0x50c] ss:$16 sps:$4 sm:$0xff]   ;;  %v325_v60 = vrot.slane %v6081_v56, %v6076_v55 }
  0xdd   :  { %1933 = vmatprep.subr.bf16.mxu1 %v4943_v61  ;;  %v4983_v31 = vld [vmem:[%s6835_s1 + $0x728] ss:$16 sps:$4 sm:$0xff]   ;;  %v4991_v33 = vld [vmem:[%s6835_s1 + $0x70c] ss:$16 sps:$4 sm:$0xff]   ;;  %v321_v61 = vrot.slane %v6081_v56, %v6084_v57 }
  0xde   :  { %v4986_v34 = vld [vmem:[%s6835_s1 + $0x508] ss:$16 sps:$4 sm:$0xff]  }
  0xdf   :  { %1891 = vmatpush1.bf16.msra.mxu0 %v4938_v62  ;;  %v4989_v35 = vld [vmem:[%s6835_s1 + $0x708] ss:$16 sps:$4 sm:$0xff]  }
  0xe0   :  { %1934 = vmatpush1.bf16.msra.mxu1 %v4941_v63  ;;  %1892 = vmatprep.subr.bf16.mxu0 %v4946_v0  ;;  %v4992_v36 = vld [vmem:[%s6837_s3 + $0x78] sm:$0xff]   ;;  %v4996_v40 = vld [vmem:[%s6837_s3 + $0x68] sm:$0xff]  }
  0xe1   :  { %1935 = vmatprep.subr.bf16.mxu1 %v4949_v1  ;;  %v4993_v37 = vld [vmem:[%s6837_s3 + $0x38] sm:$0xff]   ;;  %v4997_v53 = vld [vmem:[%s6837_s3 + $0x28] sm:$0xff]  }
  0xe2   :  { %v5008_v54 = vld [vmem:[%s6837_s3 + $0xb8] sm:$0xff]   ;;  %v5004_v43 = vld [vmem:[%s6837_s3 + $0x48] sm:$0xff]  }
  0xe3   :  { %1893 = vmatpush2.bf16.msra.mxu0 %v4944_v2  ;;  %v5000_v12 = vld [vmem:[%s6837_s3 + $0x58] sm:$0xff]   ;;  %v5005_v44 = vld [vmem:[%s6837_s3 + $0x8] sm:$0xff]  }
  0xe4   :  { %1936 = vmatpush2.bf16.msra.mxu1 %v4947_v3  ;;  %1894 = vmatprep.subr.bf16.mxu0 %v4952_v4  ;;  %v5001_v42 = vld [vmem:[%s6837_s3 + $0x18] sm:$0xff]  }
  0xe5   :  { %1937 = vmatprep.subr.bf16.mxu1 %v4955_v5  ;;  %v5010_v5 = vld [vmem:[%s6837_s3 + $0xa8] sm:$0xff]  }
  0xe7   :  { %1895 = vmatpush2.bf16.msra.mxu0 %v4950_v6 }
  0xe8   :  { %1938 = vmatpush2.bf16.msra.mxu1 %v4953_v7  ;;  %1896 = vmatprep.subr.bf16.mxu0 %v4958_v8 }
  0xe9   :  { %1939 = vmatprep.subr.bf16.mxu1 %v4961_v9 }
  0xeb   :  { %1897 = vmatpush2.bf16.msra.mxu0 %v4956_v10 }
  0xec   :  { %1940 = vmatpush2.bf16.msra.mxu1 %v4959_v11  ;;  %1898 = vmatprep.subr.bf16.mxu0 %v4964_v14 }
  0xed   :  { %1941 = vmatprep.subr.bf16.mxu1 %v4967_v15 }
  0xef   :  { %1899 = vmatpush2.bf16.msra.mxu0 %v4962_v16 }
  0xf0   :  { %1942 = vmatpush2.bf16.msra.mxu1 %v4965_v17  ;;  %1900 = vmatprep.subr.bf16.mxu0 %v4970_v18  ;;  %v5011_v17 = vld [vmem:[%s6837_s3 + $0xa0] sm:$0xff]  }
  0xf1   :  { %1943 = vmatprep.subr.bf16.mxu1 %v4973_v19 }
  0xf3   :  { %1901 = vmatpush2.bf16.msra.mxu0 %v4968_v20 }
  0xf4   :  { %1944 = vmatpush2.bf16.msra.mxu1 %v4971_v21  ;;  %1902 = vmatprep.subr.bf16.mxu0 %v4976_v22 }
  0xf5   :  { %1945 = vmatprep.subr.bf16.mxu1 %v4979_v23 }
  0xf7   :  { %1903 = vmatpush2.bf16.msra.mxu0 %v4974_v24 }
  0xf8   :  { %1946 = vmatpush2.bf16.msra.mxu1 %v4977_v25  ;;  %1904 = vmatprep.subr.bf16.mxu0 %v4982_v26 }
  0xf9   :  { %1947 = vmatprep.subr.bf16.mxu1 %v4985_v27  ;;  %v5012_v27 = vld [vmem:[%s6837_s3 + $0x98] sm:$0xff]  }
  0xfb   :  { %1905 = vmatpush2.bf16.msra.mxu0 %v4980_v30 }
  0xfc   :  { %1948 = vmatpush2.bf16.msra.mxu1 %v4983_v31  ;;  %1906 = vmatprep.subr.bf16.mxu0 %v4988_v32 }
  0xfd   :  { %1949 = vmatprep.subr.bf16.mxu1 %v4991_v33  ;;  %v5013_v33 = vld [vmem:[%s6837_s3 + $0x90] sm:$0xff]  }
  0xff   :  { %1907 = vmatpush2.bf16.msra.mxu0 %v4986_v34  ;;  %v5014_v34 = vld [vmem:[%s6837_s3 + $0x88] sm:$0xff]  }
 0x100   :  { %1950 = vmatpush2.bf16.msra.mxu1 %v4989_v35  ;;  %4578 = vmatprep.subr.bf16.mxu0 %v4992_v36  ;;  %v5015_v35 = vld [vmem:[%s6837_s3 + $0x80] sm:$0xff]  }
 0x101   :  { %2226 = vmatprep.subr.bf16.mxu1 %v5107_v13  ;;  %v5016_v36 = vld [vmem:[%s6837_s3 + $0xc0] sm:$0xff]  }
 0x102   :  { %1909 = vmatmul.mubr.bf16.vlgmr.msra.gmra.mxu0 %v5623_v28  ;;  %v4998_v28 = vld [vmem:[%s6837_s3 + $0x60] sm:$0xff]   ;;  %v1652_v51 = vpop.f32.mrf.mxu0 }
 0x103   :  { %1952 = vmatmul.mubr.bf16.vlgmr.msra.gmra.mxu1 %v5625_v29  ;;  %4579 = vmatpush3.bf16.msra.mxu0 %v4993_v37  ;;  %v4999_v29 = vld [vmem:[%s6837_s3 + $0x20] sm:$0xff]   ;;  %v1695_v52 = vpop.f32.mrf.mxu1  ;;  %v1653_v1 = vadd.f32 %v1652_v51, %v321_v61 }
 0x104   :  { %4580 = vmatprep.subr.bf16.mxu0 %v4994_v38  ;;  %2227 = vmatpush1.bf16.msra.mxu1 %v5008_v54  ;;  %v1654_v58 = vpop.f32.mrf.mxu0 }
 0x105   :  { %2228 = vmatprep.subr.bf16.mxu1 %v5107_v13  ;;  %v1697_v59 = vpop.f32.mrf.mxu1  ;;  %v1655_v0 = vadd.f32 %v1654_v58, %v325_v60  ;;  %v1696_v10 = vadd.f32 %v1695_v52, %v1653_v1 }
 0x106   :  { %v1656_v62 = vpop.f32.mrf.mxu0 }
 0x107   :  { %4581 = vmatpush3.bf16.msra.mxu0 %v4995_v39  ;;  %v1699_v63 = vpop.f32.mrf.mxu1  ;;  %v1657_v4 = vadd.f32 %v1656_v62, %v321_v61  ;;  %v1698_v8 = vadd.f32 %v1697_v59, %v1655_v0 }
 0x108   :  { %4582 = vmatprep.subr.bf16.mxu0 %v4996_v40  ;;  %2229 = vmatpush1.bf16.msra.mxu1 %v5009_v41  ;;  %v1658_v2 = vpop.f32.mrf.mxu0  ;;  %v6121_v41 = vsub.s32 2, %v6073_v50 }
 0x109   :  { %2230 = vmatprep.subr.bf16.mxu1 %v5107_v13  ;;  %v1701_v3 = vpop.f32.mrf.mxu1  ;;  %v1659_v9 = vadd.f32 %v1658_v2, %v325_v60  ;;  %v1700_v15 = vadd.f32 %v1699_v63, %v1657_v4 }
 0x10b   :  { %4583 = vmatpush3.bf16.msra.mxu0 %v4997_v53  ;;  %v1702_v21 = vadd.f32 %v1701_v3, %v1659_v9 }
 0x10c   :  { %4584 = vmatprep.subr.bf16.mxu0 %v4998_v28  ;;  %2231 = vmatpush1.bf16.msra.mxu1 %v5010_v5 }
 0x10d   :  { %2232 = vmatprep.subr.bf16.mxu1 %v5107_v13 }
 0x10f   :  { %4585 = vmatpush3.bf16.msra.mxu0 %v4999_v29 }
 0x110   :  { %4586 = vmatprep.subr.bf16.mxu0 %v5000_v12  ;;  %2233 = vmatpush1.bf16.msra.mxu1 %v5011_v17  ;;  %v6118_v12 = vsub.s32 3, %v6073_v50 }
 0x111   :  { %2234 = vmatprep.subr.bf16.mxu1 %v5107_v13 }
 0x113   :  { %4587 = vmatpush3.bf16.msra.mxu0 %v5001_v42 }
 0x114   :  { %4588 = vmatprep.subr.bf16.mxu0 %v5002_v45  ;;  %2235 = vmatpush1.bf16.msra.mxu1 %v5012_v27 }
 0x115   :  { %2236 = vmatprep.subr.bf16.mxu1 %v5107_v13 }
 0x117   :  { %4589 = vmatpush3.bf16.msra.mxu0 %v5003_v47  ;;  %v329_v47 = vrot.slane %v6081_v56, %v6121_v41 }
 0x118   :  { %4590 = vmatprep.subr.bf16.mxu0 %v5004_v43  ;;  %2237 = vmatpush1.bf16.msra.mxu1 %v5013_v33  ;;  %v2442_v33 = vld [vmem:[%s6841_s7 + $0x160] sm:$0xff] }
 0x119   :  { %2238 = vmatprep.subr.bf16.mxu1 %v5107_v13 }
 0x11b   :  { %4591 = vmatpush3.bf16.msra.mxu0 %v5005_v44 }
 0x11c   :  { %4592 = vmatprep.subr.bf16.mxu0 %v5006_v46  ;;  %2239 = vmatpush1.bf16.msra.mxu1 %v5014_v34 }
 0x11d   :  { %2240 = vmatprep.subr.bf16.mxu1 %v5107_v13 }
 0x11f   :  { %4593 = vmatpush3.bf16.msra.mxu0 %v5007_v48 }
 0x120   :  { %2241 = vmatpush1.bf16.msra.mxu1 %v5015_v35 }
 0x121   :  { %2256 = vmatprep.subr.bf16.mxu1 %v5107_v13  ;;  %v333_v13 = vrot.slane %v6081_v56, %v6118_v12 }
 0x124   :  { %2257 = vmatpush2.bf16.msra.mxu1 %v5016_v36  ;;  %v2582_v36 = vld [vmem:[%s6841_s7 + $0x5c0] sm:$0xff] }
 0x142   :  { %v1738_v6 = vpop.f32.mrf.mxu0 }
 0x143   :  { %v1781_v7 = vpop.f32.mrf.mxu1  ;;  %v1739_v18 = vadd.f32 %v1738_v6, %v1696_v10 }
 0x144   :  { %v1740_v11 = vpop.f32.mrf.mxu0 }
 0x145   :  { %v1783_v14 = vpop.f32.mrf.mxu1  ;;  %v1741_v16 = vadd.f32 %v1740_v11, %v1698_v8  ;;  %v1782_v30 = vadd.f32 %v1781_v7, %v1739_v18 }
 0x146   :  { %v1742_v19 = vpop.f32.mrf.mxu0 }
 0x147   :  { %v1785_v20 = vpop.f32.mrf.mxu1  ;;  %v1784_v22 = vadd.f32 %v1783_v14, %v1741_v16  ;;  %v1743_v23 = vadd.f32 %v1742_v19, %v1700_v15 }
 0x148   :  { %v1744_v24 = vpop.f32.mrf.mxu0 }
 0x149   :  { %v1786_v25 = vadd.f32 %v1785_v20, %v1743_v23  ;;  %v1745_v26 = vadd.f32 %v1744_v24, %v1702_v21  ;;  %v1787_v31 = vpop.f32.mrf.mxu1  ;;  %5017 = vtanh.f32 %v1784_v22  ;;  %v5108_v22 = vmov 1   ;;  %v2454_v23 = vld [vmem:[%s6841_s7 + $0x1c0] sm:$0xff] }
 0x14a   :  { %4606 = vset.pattern.permute.xlu1 %v5108_v22  ;;  %v2458_v24 = vld [vmem:[%s6841_s7 + $0x1e0] sm:$0xff] }
 0x14b   :  { %v1788_v32 = vadd.f32 %v1787_v31, %v1745_v26  ;;  %5019 = vtanh.f32 %v1786_v25  ;;  %v2446_v25 = vld [vmem:[%s6841_s7 + $0x180] sm:$0xff]  ;;  %v4430_v26 = vcombine.low %v2454_v23, %v2458_v24  ;;  %v4431_v27 = vcombine.high %v2454_v23, %v2458_v24 }
 0x14d   :  { %5021 = vtanh.f32 %v1788_v32  ;;  %v2438_v32 = vld [vmem:[%s6841_s7 + $0x140] sm:$0xff]  ;;  %3643 = vmatprep.subr.bf16.mxu0 %v4431_v27 }
 0x14e   :  { %5023 = vtanh.f32 %v1782_v30  ;;  %v2450_v30 = vld [vmem:[%s6841_s7 + $0x1a0] sm:$0xff]  ;;  %v4415_v35 = vcombine.high %v2438_v32, %v2442_v33 }
 0x14f   :  { %v4423_v31 = vcombine.high %v2446_v25, %v2450_v30  ;;  %v4422_v34 = vcombine.low %v2446_v25, %v2450_v30 }
 0x156   :  { %v5018_v37 = vpop.eup %5017 }
 0x158   :  { %v5020_v38 = vpop.eup %5019 }
 0x15a   :  { %v5022_v39 = vpop.eup %5021 }
 0x15b   :  { %v5024_v40 = vpop.eup %5023  ;;  %v1971_v53 = vpack.c.bf16 %v5022_v39, %v5018_v37  ;;  %v2586_v37 = vld [vmem:[%s6841_s7 + $0x5e0] sm:$0xff] }
 0x15c   :  { %v1970_v28 = vpack.c.bf16 %v5020_v38, %v5024_v40  ;;  %v2430_v38 = vld [vmem:[%s6841_s7 + $0x100] sm:$0xff]  ;;  %v4558_v40 = vcombine.low %v2582_v36, %v2586_v37 }
 0x15d   :  { %2217 = vmatprep.mubr.bf16.mxu0 %v1971_v53  ;;  %v2434_v39 = vld [vmem:[%s6841_s7 + $0x120] sm:$0xff]  ;;  %v4559_v53 = vcombine.high %v2582_v36, %v2586_v37 }
 0x15e   :  { %2218 = vmatmul.mubr.bf16.vlgmr.msra.gmra.mxu0 %v1970_v28  ;;  %v2574_v28 = vld [vmem:[%s6841_s7 + $0x580] sm:$0xff] }
 0x15f   :  { %3644 = vmatpush1.bf16.msra.mxu0 %v4430_v26  ;;  %3686 = vmatprep.subr.bf16.mxu1 %v4559_v53  ;;  %v2558_v36 = vld [vmem:[%s6841_s7 + $0x500] sm:$0xff] }
 0x160   :  { %3645 = vmatprep.subr.bf16.mxu0 %v4423_v31 }
 0x163   :  { %3646 = vmatpush1.bf16.msra.mxu0 %v4422_v34  ;;  %v2502_v34 = vld [vmem:[%s6841_s7 + $0x340] sm:$0xff] }
 0x164   :  { %3647 = vmatprep.subr.bf16.mxu0 %v4415_v35  ;;  %v2506_v35 = vld [vmem:[%s6841_s7 + $0x360] sm:$0xff] }
 0x165   :  { %v4478_v37 = vcombine.low %v2502_v34, %v2506_v35 }
 0x182   :  { %v1824_v29 = vpop.f32.mrf.mxu0 }
 0x183   :  { %v1867_v54 = vpop.f32.mrf.mxu1  ;;  %v1825_v48 = vadd.f32 %v1824_v29, %v329_v47  ;;  %v2578_v29 = vld [vmem:[%s6841_s7 + $0x5a0] sm:$0xff] }
 0x184   :  { %v1826_v42 = vpop.f32.mrf.mxu0 }
 0x185   :  { %v1869_v45 = vpop.f32.mrf.mxu1  ;;  %v1827_v46 = vadd.f32 %v1826_v42, %v333_v13  ;;  %v1868_v62 = vadd.f32 %v1867_v54, %v1825_v48  ;;  %v4414_v54 = vcombine.low %v2438_v32, %v2442_v33  ;;  %v4551_v42 = vcombine.high %v2574_v28, %v2578_v29 }
 0x186   :  { %v1828_v43 = vpop.f32.mrf.mxu0 }
 0x187   :  { %v1871_v44 = vpop.f32.mrf.mxu1  ;;  %v1829_v52 = vadd.f32 %v1828_v43, %v329_v47  ;;  %v1870_v60 = vadd.f32 %v1869_v45, %v1827_v46  ;;  %v2566_v45 = vld [vmem:[%s6841_s7 + $0x540] sm:$0xff]  ;;  %v4407_v47 = vcombine.high %v2430_v38, %v2434_v39  ;;  %v4550_v43 = vcombine.low %v2574_v28, %v2578_v29  ;;  %3648 = vmatpush1.bf16.msra.mxu0 %v4414_v54 }
 0x188   :  { %v1830_v49 = vpop.f32.mrf.mxu0  ;;  %v2426_v46 = vld [vmem:[%s6841_s7 + $0xe0] sm:$0xff] }
 0x189   :  { %v1873_v51 = vpop.f32.mrf.mxu1  ;;  %v1831_v61 = vadd.f32 %v1830_v49, %v333_v13  ;;  %v1872_v1 = vadd.f32 %v1871_v44, %v1829_v52  ;;  %v2570_v13 = vld [vmem:[%s6841_s7 + $0x560] sm:$0xff]  ;;  %v4406_v49 = vcombine.low %v2430_v38, %v2434_v39  ;;  %3649 = vmatprep.subr.bf16.mxu0 %v4407_v47  ;;  %v4479_v38 = vcombine.high %v2502_v34, %v2506_v35 }
 0x18a   :  { %v2422_v44 = vld [vmem:[%s6841_s7 + $0xc0] sm:$0xff]  ;;  %v4543_v48 = vcombine.high %v2566_v45, %v2570_v13  ;;  %v4542_v52 = vcombine.low %v2566_v45, %v2570_v13 }
 0x18b   :  { %v1874_v56 = vadd.f32 %v1873_v51, %v1831_v61  ;;  %v4399_v51 = vcombine.high %v2422_v44, %v2426_v46  ;;  %3650 = vmatpush1.bf16.msra.mxu0 %v4406_v49  ;;  %v2562_v39 = vld [vmem:[%s6841_s7 + $0x520] sm:$0xff] }
 0x18c   :  { %v4535_v53 = vcombine.high %v2558_v36, %v2562_v39  ;;  %v2494_v54 = vld [vmem:[%s6841_s7 + $0x300] sm:$0xff] }
 0x18d   :  { %3651 = vmatprep.subr.bf16.mxu0 %v4399_v51  ;;  %v2550_v45 = vld [vmem:[%s6841_s7 + $0x4c0] sm:$0xff] }
 0x18e   :  { %v2554_v47 = vld [vmem:[%s6841_s7 + $0x4e0] sm:$0xff] }
 0x18f   :  { %v2490_v49 = vld [vmem:[%s6841_s7 + $0x2e0] sm:$0xff] }
 0x190   :  { %v2542_v51 = vld [vmem:[%s6841_s7 + $0x480] sm:$0xff] }
 0x191   :  { %v2269_v34 = vld [vmem:[%s6839_s5] ss:$2 sm:$0xf] }
 0x1c2   :  { %v1910_v58 = vpop.f32.mrf.mxu0 }
 0x1c3   :  { %v1953_v59 = vpop.f32.mrf.mxu1  ;;  %v1911_v3 = vadd.f32 %v1910_v58, %v1868_v62  ;;  %v2414_v58 = vld [vmem:[%s6841_s7 + $0x80] sm:$0xff] }
 0x1c4   :  { %v1912_v63 = vpop.f32.mrf.mxu0  ;;  %v2406_v62 = vld [vmem:[%s6841_s7 + $0x40] sm:$0xff] }
 0x1c5   :  { %v1955_v0 = vpop.f32.mrf.mxu1  ;;  %v1913_v2 = vadd.f32 %v1912_v63, %v1870_v60  ;;  %v1954_v11 = vadd.f32 %v1953_v59, %v1911_v3  ;;  %v2418_v59 = vld [vmem:[%s6841_s7 + $0xa0] sm:$0xff]  ;;  %v4398_v60 = vcombine.low %v2422_v44, %v2426_v46  ;;  %v4526_v44 = vcombine.low %v2550_v45, %v2554_v47 }
 0x1c6   :  { %v1914_v4 = vpop.f32.mrf.mxu0  ;;  %v4391_v61 = vcombine.high %v2414_v58, %v2418_v59  ;;  %v2410_v63 = vld [vmem:[%s6841_s7 + $0x60] sm:$0xff]  ;;  %v4527_v46 = vcombine.high %v2550_v45, %v2554_v47 }
 0x1c7   :  { %v1957_v5 = vpop.f32.mrf.mxu1  ;;  %v1956_v6 = vadd.f32 %v1955_v0, %v1913_v2  ;;  %v1915_v7 = vadd.f32 %v1914_v4, %v1872_v1  ;;  %3652 = vmatpush1.bf16.msra.mxu0 %v4398_v60  ;;  %v4390_v0 = vcombine.low %v2414_v58, %v2418_v59  ;;  %v4383_v1 = vcombine.high %v2406_v62, %v2410_v63  ;;  %v2398_v2 = vld [vmem:[%s6841_s7] sm:$0xff] }
 0x1c8   :  { %v1916_v8 = vpop.f32.mrf.mxu0  ;;  %3653 = vmatprep.subr.bf16.mxu0 %v4391_v61  ;;  %v2402_v3 = vld [vmem:[%s6841_s7 + $0x20] sm:$0xff]  ;;  %v4382_v4 = vcombine.low %v2406_v62, %v2410_v63 }
 0x1c9   :  { %v1958_v9 = vadd.f32 %v1957_v5, %v1915_v7  ;;  %v1917_v10 = vadd.f32 %v1916_v8, %v1874_v56  ;;  %v1959_v14 = vpop.f32.mrf.mxu1  ;;  %5025 = vtanh.f32 %v1956_v6  ;;  %v4375_v5 = vcombine.high %v2398_v2, %v2402_v3  ;;  %v2518_v56 = vld [vmem:[%s6841_s7 + $0x3c0] sm:$0xff] }
 0x1ca   :  { %v2522_v6 = vld [vmem:[%s6841_s7 + $0x3e0] sm:$0xff]  ;;  %v4374_v7 = vcombine.low %v2398_v2, %v2402_v3 }
 0x1cb   :  { %v1960_v15 = vadd.f32 %v1959_v14, %v1917_v10  ;;  %5027 = vtanh.f32 %v1958_v9  ;;  %3654 = vmatpush1.bf16.msra.mxu0 %v4390_v0  ;;  %v4495_v8 = vcombine.high %v2518_v56, %v2522_v6  ;;  %v2510_v9 = vld [vmem:[%s6841_s7 + $0x380] sm:$0xff] }
 0x1cc   :  { %3655 = vmatprep.subr.bf16.mxu0 %v4383_v1  ;;  %v2514_v10 = vld [vmem:[%s6841_s7 + $0x3a0] sm:$0xff] }
 0x1cd   :  { %5029 = vtanh.f32 %v1960_v15  ;;  %v4487_v14 = vcombine.high %v2510_v9, %v2514_v10  ;;  %v4486_v15 = vcombine.low %v2510_v9, %v2514_v10  ;;  %v2546_v58 = vld [vmem:[%s6841_s7 + $0x4a0] sm:$0xff] }
 0x1ce   :  { %5031 = vtanh.f32 %v1954_v11  ;;  %v4494_v11 = vcombine.low %v2518_v56, %v2522_v6  ;;  %v4518_v60 = vcombine.low %v2542_v51, %v2546_v58  ;;  %v4519_v61 = vcombine.high %v2542_v51, %v2546_v58  ;;  %v2478_v62 = vld [vmem:[%s6841_s7 + $0x280] sm:$0xff] }
 0x1cf   :  { %3656 = vmatpush1.bf16.msra.mxu0 %v4382_v4  ;;  %v2482_v63 = vld [vmem:[%s6841_s7 + $0x2a0] sm:$0xff] }
 0x1d0   :  { %3657 = vmatprep.subr.bf16.mxu0 %v4375_v5  ;;  %v2534_v0 = vld [vmem:[%s6841_s7 + $0x440] sm:$0xff]  ;;  %v4454_v1 = vcombine.low %v2478_v62, %v2482_v63 }
 0x1d1   :  { %v2538_v2 = vld [vmem:[%s6841_s7 + $0x460] sm:$0xff] }
 0x1d2   :  { %v2470_v3 = vld [vmem:[%s6841_s7 + $0x240] sm:$0xff]  ;;  %v4510_v5 = vcombine.low %v2534_v0, %v2538_v2  ;;  %v4511_v56 = vcombine.high %v2534_v0, %v2538_v2 }
 0x1d3   :  { %3658 = vmatpush1.bf16.msra.mxu0 %v4374_v7  ;;  %v2474_v4 = vld [vmem:[%s6841_s7 + $0x260] sm:$0xff] }
 0x1d4   :  { %3659 = vmatprep.subr.bf16.mxu0 %v4495_v8  ;;  %v4447_v6 = vcombine.high %v2470_v3, %v2474_v4  ;;  %v2526_v7 = vld [vmem:[%s6841_s7 + $0x400] sm:$0xff] }
 0x1d5   :  { %v2530_v8 = vld [vmem:[%s6841_s7 + $0x420] sm:$0xff] }
 0x1d6   :  { %v5026_v16 = vpop.eup %5025  ;;  %v4503_v9 = vcombine.high %v2526_v7, %v2530_v8  ;;  %v2462_v10 = vld [vmem:[%s6841_s7 + $0x200] sm:$0xff] }
 0x1d7   :  { %3660 = vmatpush2.bf16.msra.mxu0 %v4494_v11  ;;  %v2466_v11 = vld [vmem:[%s6841_s7 + $0x220] sm:$0xff] }
 0x1d8   :  { %v5028_v17 = vpop.eup %5027  ;;  %3661 = vmatprep.subr.bf16.mxu0 %v4487_v14  ;;  %v2590_v14 = vld [vmem:[%s6841_s7 + $0x600] sm:$0xff] }
 0x1da   :  { %v5030_v18 = vpop.eup %5029 }
 0x1db   :  { %v5032_v19 = vpop.eup %5031  ;;  %v1973_v20 = vpack.c.bf16 %v5030_v18, %v5026_v16  ;;  %3662 = vmatpush2.bf16.msra.mxu0 %v4486_v15  ;;  %v2594_v15 = vld [vmem:[%s6841_s7 + $0x620] sm:$0xff] }
 0x1dc   :  { %v1972_v21 = vpack.c.bf16 %v5028_v17, %v5032_v19  ;;  %3663 = vmatprep.subr.bf16.mxu0 %v4479_v38 }
 0x1dd   :  { %4372 = vmatprep.mubr.msk.bf16.mxu1 %vm2181_vm0, %v1973_v20 }
 0x1de   :  { %2259 = vmatmul.mubr.bf16.vlgmr.msra.gmra.mxu1 %v1972_v21  ;;  %v4346_v21 = vld [vmem:[%s6838_s4] ss:$0 sm:$0xff] }
 0x1df   :  { %3687 = vmatpush1.bf16.msra.mxu1 %v4558_v40  ;;  %v4534_v40 = vcombine.low %v2558_v36, %v2562_v39  ;;  %3664 = vmatpush2.bf16.msra.mxu0 %v4478_v37  ;;  %v2356_v39 = vld [vmem:[%s6840_s6] sm:$0xf] }
 0x1e0   :  { %3688 = vmatprep.subr.bf16.mxu1 %v4551_v42  ;;  %v2498_v42 = vld [vmem:[%s6841_s7 + $0x320] sm:$0xff]  ;;  %v2361_v45 = vrot.slane %v2356_v39, %v6084_v57  ;;  %v2369_v47 = vrot.slane %v2356_v39, %v6121_v41 }
 0x1e1   :  { %v4471_v13 = vcombine.high %v2494_v54, %v2498_v42 }
 0x1e3   :  { %3689 = vmatpush1.bf16.msra.mxu1 %v4550_v43  ;;  %v4470_v43 = vcombine.low %v2494_v54, %v2498_v42  ;;  %3665 = vmatprep.subr.bf16.mxu0 %v4471_v13  ;;  %v2365_v13 = vrot.slane %v2356_v39, %v6076_v55 }
 0x1e4   :  { %3690 = vmatprep.subr.bf16.mxu1 %v4543_v48  ;;  %v2486_v48 = vld [vmem:[%s6841_s7 + $0x2c0] sm:$0xff] }
 0x1e5   :  { %3666 = vmatpush2.bf16.msra.mxu0 %v4470_v43  ;;  %v4462_v59 = vcombine.low %v2486_v48, %v2490_v49 }
 0x1e7   :  { %3691 = vmatpush1.bf16.msra.mxu1 %v4542_v52  ;;  %v4463_v52 = vcombine.high %v2486_v48, %v2490_v49 }
 0x1e8   :  { %3692 = vmatprep.subr.bf16.mxu1 %v4535_v53  ;;  %v2288_v53 = vrot.slane %v2269_v34, %v6076_v55 }
 0x1e9   :  { %3667 = vmatprep.subr.bf16.mxu0 %v4463_v52 }
 0x1ea   :  { %3668 = vmatpush2.bf16.msra.mxu0 %v4462_v59  ;;  %v2373_v59 = vrot.slane %v2356_v39, %v6118_v12 }
 0x1eb   :  { %3693 = vmatpush1.bf16.msra.mxu1 %v4534_v40  ;;  %v2284_v40 = vrot.slane %v2269_v34, %v6084_v57 }
 0x1ec   :  { %3694 = vmatprep.subr.bf16.mxu1 %v4527_v46 }
 0x1ef   :  { %3695 = vmatpush1.bf16.msra.mxu1 %v4526_v44 }
 0x1f0   :  { %3696 = vmatprep.subr.bf16.mxu1 %v4519_v61 }
 0x1f3   :  { %3697 = vmatpush1.bf16.msra.mxu1 %v4518_v60 }
 0x1f4   :  { %3698 = vmatprep.subr.bf16.mxu1 %v4511_v56 }
 0x1f7   :  { %3699 = vmatpush1.bf16.msra.mxu1 %v4510_v5 }
 0x1f8   :  { %3700 = vmatprep.subr.bf16.mxu1 %v4503_v9 }
 0x21e   :  { %v4594_v16 = vpop.f32.mrf.mxu0 }
 0x220   :  { %v4595_v17 = vpop.f32.mrf.mxu0 }
 0x221   :  { %v4596_v19 = vadd.f32 %v4595_v17, %v4594_v16  ;;  %v4446_v16 = vcombine.low %v2470_v3, %v2474_v4  ;;  %v4502_v17 = vcombine.low %v2526_v7, %v2530_v8 }
 0x222   :  { %v4597_v18 = vpop.f32.mrf.mxu0 }
 0x223   :  { %v2220_v24 = vadd.f32 %v4596_v19, %v4346_v21  ;;  %v4567_v19 = vcombine.high %v2590_v14, %v2594_v15  ;;  %3701 = vmatpush1.bf16.msra.mxu1 %v4502_v17 }
 0x224   :  { %v4598_v20 = vpop.f32.mrf.mxu0 }
 0x225   :  { %v4599_v23 = vadd.f32 %v4598_v20, %v4597_v18  ;;  %v4439_v18 = vcombine.high %v2462_v10, %v2466_v11  ;;  %v4438_v20 = vcombine.low %v2462_v10, %v2466_v11  ;;  %3716 = vmatprep.subr.bf16.mxu1 %v4567_v19 }
 0x227   :  { %v2223_v30 = vadd.f32 %v4599_v23, %v4346_v21  ;;  %v4566_v21 = vcombine.low %v2590_v14, %v2594_v15  ;;  %v6292_v23 = vld [vmem:[%s6841_s7 + $0x1c8] sm:$0xff] }
 0x229   :  { %3717 = vmatpush2.bf16.msra.mxu1 %v4566_v21 }
 0x29e   :  { %v2260_v25 = vpop.f32.mrf.mxu1 }
 0x29f   :  { %v2261_v26 = vadd.f32 %v2260_v25, %v2220_v24  ;;  %v6297_v24 = vld [vmem:[%s6841_s7 + $0x1e8] sm:$0xff] }
 0x2a0   :  { %v2262_v27 = vpop.f32.mrf.mxu1  ;;  %v6302_v25 = vld [vmem:[%s6841_s7 + $0x5c8] sm:$0xff] }
 0x2a1   :  { %5033 = vtanh.f32 %v2261_v26  ;;  %v4433_v26 = vcombine.high %v6292_v23, %v6297_v24  ;;  %v6309_v27 = vld [vmem:[%s6841_s7 + $0x5e8] sm:$0xff] }
 0x2a2   :  { %v2263_v31 = vpop.f32.mrf.mxu1 }
 0x2a3   :  { %v2264_v32 = vadd.f32 %v2263_v31, %v2223_v30  ;;  %v4432_v30 = vcombine.low %v6292_v23, %v6297_v24  ;;  %v4560_v31 = vcombine.low %v6302_v25, %v6309_v27  ;;  %3729 = vmatprep.subr.bf16.mxu1 %v4433_v26  ;;  %v2431_v23 = vld [vmem:[%s6841_s7 + $0x108] sm:$0xff] }
 0x2a4   :  { %v2265_v33 = vpop.f32.mrf.mxu1  ;;  %v2435_v24 = vld [vmem:[%s6841_s7 + $0x128] sm:$0xff] }
 0x2a5   :  { %5035 = vtanh.f32 %v2264_v32  ;;  %v4561_v32 = vcombine.high %v6302_v25, %v6309_v27  ;;  %v4373_v33 = vld [vmem:[%s6839_s5 + $0x1] ss:$2 sm:$0xf]  ;;  %v2559_v27 = vld [vmem:[%s6841_s7 + $0x508] sm:$0xff] }
 0x2a6   :  { %v2323_v35 = vrot.slane %v4373_v33, %v6084_v57  ;;  %v2327_v36 = vrot.slane %v4373_v33, %v6076_v55  ;;  %v2331_v37 = vrot.slane %v4373_v33, %v6121_v41  ;;  %v2335_v38 = vrot.slane %v4373_v33, %v6118_v12 }
 0x2ae   :  { %v5034_v28 = vpop.eup %5033 }
 0x2af   :  { %4052 = vst.msk [vmem:[%s6843_s9] sm:$0xff] %vm4051_vm1, %v5034_v28  ;;  %2312 = vperm.xlu1 %4606, %v5034_v28   ;;  %2272 = vperm.xlu0 %4605, %v5034_v28   ;;  %v2292_v28 = vrot.slane %v2269_v34, %v6121_v41 }
 0x2b2   :  { %v5036_v29 = vpop.eup %5035 }
 0x2b3   :  { %4053 = vst.msk [vmem:[%s6843_s9 + $0x8] sm:$0xff] %vm4051_vm1, %v5036_v29  ;;  %2316 = vperm.xlu1 %4606, %v5036_v29   ;;  %2277 = vperm.xlu0 %4605, %v5036_v29   ;;  %v2296_v29 = vrot.slane %v2269_v34, %v6118_v12 }
 0x2b7   :  { %4607 = vset.pattern.permute.xlu0 %v5108_v22  ;;  %v4455_v22 = vcombine.high %v2478_v62, %v2482_v63 }
 0x2b9   :  { %3669 = vmatprep.subr.bf16.mxu0 %v4455_v22 }
 0x2ba   :  { %3670 = vmatpush2.bf16.msra.mxu0 %v4454_v1 }
 0x2bb   :  { %3671 = vmatprep.subr.bf16.mxu0 %v4447_v6 }
 0x2be   :  { %3672 = vmatpush2.bf16.msra.mxu0 %v4446_v16 }
 0x2bf   :  { %3673 = vmatprep.subr.bf16.mxu0 %v4439_v18 }
 0x2c2   :  { %3674 = vmatpush2.bf16.msra.mxu0 %v4438_v20 }
 0x2c3   :  { %3772 = vmatprep.subr.bf16.mxu0 %v4561_v32 }
 0x32a   :  { %v2313_v54 = vpop.permute.xlu1 %2312  ;;  %v2273_v42 = vpop.permute.xlu0 %2272 }
 0x32b   :  { %v2340_v43 = vmul.f32 %v2323_v35, %v2313_v54  ;;  %v2341_v44 = vmul.f32 %v2327_v36, %v2313_v54  ;;  %v2342_v46 = vmul.f32 %v2331_v37, %v2313_v54  ;;  %v2343_v48 = vmul.f32 %v2335_v38, %v2313_v54 }
 0x32c   :  { %v2301_v49 = vmul.f32 %v2284_v40, %v2273_v42  ;;  %v2302_v51 = vmul.f32 %v2288_v53, %v2273_v42  ;;  %v2303_v52 = vmul.f32 %v2292_v28, %v2273_v42  ;;  %v2304_v58 = vmul.f32 %v2296_v29, %v2273_v42 }
 0x32e   :  { %v2317_v60 = vpop.permute.xlu1 %2316  ;;  %v2348_v61 = vadd.f32 %v2340_v43, %v2301_v49  ;;  %v2349_v62 = vadd.f32 %v2341_v44, %v2302_v51  ;;  %v2350_v63 = vadd.f32 %v2342_v46, %v2303_v52  ;;  %v2351_v0 = vadd.f32 %v2343_v48, %v2304_v58  ;;  %v2278_v1 = vpop.permute.xlu0 %2277  ;;  %v2439_v48 = vld [vmem:[%s6841_s7 + $0x148] sm:$0xff] }
 0x32f   :  { %v2344_v22 = vmul.f32 %v2323_v35, %v2317_v60  ;;  %v2345_v2 = vmul.f32 %v2327_v36, %v2317_v60  ;;  %v2346_v3 = vmul.f32 %v2331_v37, %v2317_v60  ;;  %v2347_v4 = vmul.f32 %v2335_v38, %v2317_v60  ;;  %v2447_v38 = vld [vmem:[%s6841_s7 + $0x188] sm:$0xff] }
 0x330   :  { %v2378_v5 = vadd.f32 %v2361_v45, %v2348_v61  ;;  %v2379_v56 = vadd.f32 %v2365_v13, %v2349_v62  ;;  %v2380_v6 = vadd.f32 %v2369_v47, %v2350_v63  ;;  %v2305_v7 = vmul.f32 %v2284_v40, %v2278_v1  ;;  %v2443_v49 = vld [vmem:[%s6841_s7 + $0x168] sm:$0xff] }
 0x331   :  { %v2306_v8 = vmul.f32 %v2288_v53, %v2278_v1  ;;  %v2307_v9 = vmul.f32 %v2292_v28, %v2278_v1  ;;  %v2308_v10 = vmul.f32 %v2296_v29, %v2278_v1  ;;  %v2381_v11 = vadd.f32 %v2373_v59, %v2351_v0  ;;  %v2451_v53 = vld [vmem:[%s6841_s7 + $0x1a8] sm:$0xff] }
 0x332   :  { %5037 = vtanh.f32 %v2378_v5  ;;  %v2352_v14 = vadd.f32 %v2344_v22, %v2305_v7  ;;  %v2575_v28 = vld [vmem:[%s6841_s7 + $0x588] sm:$0xff]  ;;  %v4425_v43 = vcombine.high %v2447_v38, %v2451_v53  ;;  %v4424_v25 = vcombine.low %v2447_v38, %v2451_v53 }
 0x333   :  { %v2353_v15 = vadd.f32 %v2345_v2, %v2306_v8  ;;  %v2354_v16 = vadd.f32 %v2346_v3, %v2307_v9  ;;  %5039 = vtanh.f32 %v2379_v56  ;;  %v2355_v17 = vadd.f32 %v2347_v4, %v2308_v10  ;;  %v2579_v29 = vld [vmem:[%s6841_s7 + $0x5a8] sm:$0xff] }
 0x334   :  { %5041 = vtanh.f32 %v2380_v6  ;;  %v2382_v18 = vadd.f32 %v2361_v45, %v2352_v14  ;;  %v4553_v44 = vcombine.high %v2575_v28, %v2579_v29  ;;  %v4552_v46 = vcombine.low %v2575_v28, %v2579_v29  ;;  %v2551_v60 = vld [vmem:[%s6841_s7 + $0x4c8] sm:$0xff] }
 0x335   :  { %v2383_v19 = vadd.f32 %v2365_v13, %v2353_v15  ;;  %v2384_v20 = vadd.f32 %v2369_v47, %v2354_v16  ;;  %5043 = vtanh.f32 %v2381_v11  ;;  %v2385_v21 = vadd.f32 %v2373_v59, %v2355_v17  ;;  %v2567_v13 = vld [vmem:[%s6841_s7 + $0x548] sm:$0xff] }
 0x336   :  { %5045 = vtanh.f32 %v2382_v18  ;;  %v2571_v47 = vld [vmem:[%s6841_s7 + $0x568] sm:$0xff]  ;;  %v4417_v52 = vcombine.high %v2439_v48, %v2443_v49  ;;  %v4416_v59 = vcombine.low %v2439_v48, %v2443_v49  ;;  %v4409_v62 = vcombine.high %v2431_v23, %v2435_v24 }
 0x337   :  { %5047 = vtanh.f32 %v2383_v19  ;;  %v4545_v51 = vcombine.high %v2567_v13, %v2571_v47  ;;  %v4544_v58 = vcombine.low %v2567_v13, %v2571_v47  ;;  %v2555_v61 = vld [vmem:[%s6841_s7 + $0x4e8] sm:$0xff]  ;;  %v4408_v2 = vcombine.low %v2431_v23, %v2435_v24 }
 0x338   :  { %5049 = vtanh.f32 %v2384_v20  ;;  %v2423_v0 = vld [vmem:[%s6841_s7 + $0xc8] sm:$0xff]  ;;  %v4529_v22 = vcombine.high %v2551_v60, %v2555_v61  ;;  %v4528_v56 = vcombine.low %v2551_v60, %v2555_v61  ;;  %v2440_v61 = vld [vmem:[%s6841_s7 + $0x150] sm:$0xff] }
 0x339   :  { %5051 = vtanh.f32 %v2385_v21  ;;  %v2427_v1 = vld [vmem:[%s6841_s7 + $0xe8] sm:$0xff] }
 0x33a   :  { %v2543_v3 = vld [vmem:[%s6841_s7 + $0x488] sm:$0xff]  ;;  %v4401_v5 = vcombine.high %v2423_v0, %v2427_v1  ;;  %v4400_v9 = vcombine.low %v2423_v0, %v2427_v1 }
 0x33b   :  { %v2547_v4 = vld [vmem:[%s6841_s7 + $0x4a8] sm:$0xff] }
 0x33c   :  { %v2415_v6 = vld [vmem:[%s6841_s7 + $0x88] sm:$0xff]  ;;  %v4521_v8 = vcombine.high %v2543_v3, %v2547_v4  ;;  %v4520_v15 = vcombine.low %v2543_v3, %v2547_v4  ;;  %v2432_v4 = vld [vmem:[%s6841_s7 + $0x110] sm:$0xff] }
 0x33d   :  { %v2419_v7 = vld [vmem:[%s6841_s7 + $0xa8] sm:$0xff] }
 0x33e   :  { %v2535_v10 = vld [vmem:[%s6841_s7 + $0x448] sm:$0xff]  ;;  %v4393_v14 = vcombine.high %v2415_v6, %v2419_v7  ;;  %v4392_v19 = vcombine.low %v2415_v6, %v2419_v7 }
 0x33f   :  { %v5038_v26 = vpop.eup %5037  ;;  %v2539_v11 = vld [vmem:[%s6841_s7 + $0x468] sm:$0xff] }
 0x340   :  { %v5040_v32 = vpop.eup %5039  ;;  %v2407_v16 = vld [vmem:[%s6841_s7 + $0x48] sm:$0xff]  ;;  %v4513_v18 = vcombine.high %v2535_v10, %v2539_v11 }
 0x341   :  { %v5042_v33 = vpop.eup %5041  ;;  %v2411_v17 = vld [vmem:[%s6841_s7 + $0x68] sm:$0xff] }
 0x342   :  { %v5044_v34 = vpop.eup %5043  ;;  %v2527_v20 = vld [vmem:[%s6841_s7 + $0x408] sm:$0xff] }
 0x343   :  { %v5046_v35 = vpop.eup %5045  ;;  %v2531_v21 = vld [vmem:[%s6841_s7 + $0x428] sm:$0xff] }
 0x344   :  { %v5048_v36 = vpop.eup %5047  ;;  %v6338_v37 = vpack.c.bf16 %v5046_v35, %v5038_v26  ;;  %v4385_v26 = vcombine.high %v2407_v16, %v2411_v17  ;;  %v4505_v35 = vcombine.high %v2527_v20, %v2531_v21  ;;  %v2591_v38 = vld [vmem:[%s6841_s7 + $0x608] sm:$0xff]  ;;  %v4504_v28 = vcombine.low %v2527_v20, %v2531_v21  ;;  %v2416_v21 = vld [vmem:[%s6841_s7 + $0x90] sm:$0xff] }
 0x345   :  { %v5050_v39 = vpop.eup %5049  ;;  %v6343_v40 = vpack.c.bf16 %v5048_v36, %v5040_v32  ;;  %v4512_v32 = vcombine.low %v2535_v10, %v2539_v11  ;;  %v4384_v36 = vcombine.low %v2407_v16, %v2411_v17  ;;  %v2519_v29 = vld [vmem:[%s6841_s7 + $0x3c8] sm:$0xff]  ;;  %v2424_v11 = vld [vmem:[%s6841_s7 + $0xd0] sm:$0xff] }
 0x346   :  { %v5052_v54 = vpop.eup %5051  ;;  %v6354_v42 = vpack.c.bf16 %v5050_v39, %v5042_v33  ;;  %v2399_v33 = vld [vmem:[%s6841_s7 + $0x8] sm:$0xff] }
 0x347   :  { %3675 = vmatprep.mubr.bf16.mxu0 %v6343_v40  ;;  %v6357_v45 = vpack.c.bf16 %v5052_v54, %v5044_v34  ;;  %v2403_v34 = vld [vmem:[%s6841_s7 + $0x28] sm:$0xff] }
 0x348   :  { %3676 = vmatmul.mubr.bf16.vlgmr.msra.gmra.mxu0 %v6338_v37  ;;  %v2595_v39 = vld [vmem:[%s6841_s7 + $0x628] sm:$0xff]  ;;  %v4377_v53 = vcombine.high %v2399_v33, %v2403_v34  ;;  %v4376_v47 = vcombine.low %v2399_v33, %v2403_v34 }
 0x349   :  { %4574 = vmatprep.mubr.msk.bf16.mxu1 %vm2181_vm0, %v6357_v45  ;;  %3773 = vmatpush1.bf16.msra.mxu0 %v4560_v31  ;;  %v2563_v31 = vld [vmem:[%s6841_s7 + $0x528] sm:$0xff]  ;;  %v4569_v13 = vcombine.high %v2591_v38, %v2595_v39  ;;  %v4568_v48 = vcombine.low %v2591_v38, %v2595_v39  ;;  %v2408_v39 = vld [vmem:[%s6841_s7 + $0x50] sm:$0xff] }
 0x34a   :  { %3719 = vmatmul.mubr.bf16.vlgmr.msra.gmra.mxu1 %v6354_v42  ;;  %4575 = vmatprep.mubr.msk.bf16.mxu0 %vm2181_vm0, %v6357_v45  ;;  %v4536_v63 = vcombine.low %v2559_v27, %v2563_v31  ;;  %v2523_v54 = vld [vmem:[%s6841_s7 + $0x3e8] sm:$0xff] }
 0x34b   :  { %3730 = vmatpush1.bf16.msra.mxu1 %v4432_v30  ;;  %3761 = vmatprep.mubr.bf16.mxu1 %v6343_v40  ;;  %v4537_v30 = vcombine.high %v2559_v27, %v2563_v31  ;;  %v2511_v49 = vld [vmem:[%s6841_s7 + $0x388] sm:$0xff]  ;;  %v4496_v27 = vcombine.low %v2519_v29, %v2523_v54  ;;  %v2448_v31 = vld [vmem:[%s6841_s7 + $0x190] sm:$0xff] }
 0x34c   :  { %3731 = vmatprep.subr.bf16.mxu1 %v4425_v43  ;;  %3774 = vmatprep.subr.bf16.mxu0 %v4553_v44  ;;  %v2456_v43 = vld [vmem:[%s6841_s7 + $0x1d0] sm:$0xff]  ;;  %v2503_v24 = vld [vmem:[%s6841_s7 + $0x348] sm:$0xff] }
 0x34d   :  { %3775 = vmatpush1.bf16.msra.mxu0 %v4552_v46  ;;  %v2460_v44 = vld [vmem:[%s6841_s7 + $0x1f0] sm:$0xff]  ;;  %v4497_v46 = vcombine.high %v2519_v29, %v2523_v54  ;;  %v2495_v1 = vld [vmem:[%s6841_s7 + $0x308] sm:$0xff] }
 0x34e   :  { %3776 = vmatprep.subr.bf16.mxu0 %v4545_v51  ;;  %v2515_v51 = vld [vmem:[%s6841_s7 + $0x3a8] sm:$0xff]  ;;  %v4434_v23 = vcombine.low %v2456_v43, %v2460_v44 }
 0x34f   :  { %3732 = vmatpush1.bf16.msra.mxu1 %v4424_v25  ;;  %v4435_v25 = vcombine.high %v2456_v43, %v2460_v44  ;;  %v4488_v60 = vcombine.low %v2511_v49, %v2515_v51  ;;  %v2487_v7 = vld [vmem:[%s6841_s7 + $0x2c8] sm:$0xff]  ;;  %v2400_v44 = vld [vmem:[%s6841_s7 + $0x10] sm:$0xff] }
 0x350   :  { %3733 = vmatprep.subr.bf16.mxu1 %v4417_v52  ;;  %v2452_v52 = vld [vmem:[%s6841_s7 + $0x1b0] sm:$0xff]  ;;  %v2479_v17 = vld [vmem:[%s6841_s7 + $0x288] sm:$0xff] }
 0x351   :  { %3777 = vmatpush1.bf16.msra.mxu0 %v4544_v58  ;;  %v4489_v58 = vcombine.high %v2511_v49, %v2515_v51  ;;  %v4426_v0 = vcombine.low %v2448_v31, %v2452_v52  ;;  %v2471_v34 = vld [vmem:[%s6841_s7 + $0x248] sm:$0xff]  ;;  %v2584_v51 = vld [vmem:[%s6841_s7 + $0x5d0] sm:$0xff] }
 0x352   :  { %3778 = vmatprep.subr.bf16.mxu0 %v4537_v30  ;;  %v2507_v30 = vld [vmem:[%s6841_s7 + $0x368] sm:$0xff] }
 0x353   :  { %3734 = vmatpush1.bf16.msra.mxu1 %v4416_v59  ;;  %v4427_v59 = vcombine.high %v2448_v31, %v2452_v52  ;;  %v4480_v3 = vcombine.low %v2503_v24, %v2507_v30  ;;  %v2463_v54 = vld [vmem:[%s6841_s7 + $0x208] sm:$0xff]  ;;  %v2520_v52 = vld [vmem:[%s6841_s7 + $0x3d0] sm:$0xff] }
 0x354   :  { %3735 = vmatprep.subr.bf16.mxu1 %v4409_v62  ;;  %v2444_v62 = vld [vmem:[%s6841_s7 + $0x170] sm:$0xff] }
 0x355   :  { %3779 = vmatpush1.bf16.msra.mxu0 %v4536_v63  ;;  %v4481_v63 = vcombine.high %v2503_v24, %v2507_v30  ;;  %v4418_v6 = vcombine.low %v2440_v61, %v2444_v62  ;;  %v2576_v30 = vld [vmem:[%s6841_s7 + $0x590] sm:$0xff] }
 0x356   :  { %3780 = vmatprep.subr.bf16.mxu0 %v4529_v22  ;;  %v2499_v22 = vld [vmem:[%s6841_s7 + $0x328] sm:$0xff] }
 0x357   :  { %3736 = vmatpush1.bf16.msra.mxu1 %v4408_v2  ;;  %v4419_v2 = vcombine.high %v2440_v61, %v2444_v62  ;;  %v4472_v10 = vcombine.low %v2495_v1, %v2499_v22  ;;  %v2512_v62 = vld [vmem:[%s6841_s7 + $0x390] sm:$0xff] }
 0x358   :  { %3737 = vmatprep.subr.bf16.mxu1 %v4401_v5  ;;  %v2436_v5 = vld [vmem:[%s6841_s7 + $0x130] sm:$0xff] }
 0x359   :  { %3781 = vmatpush1.bf16.msra.mxu0 %v4528_v56  ;;  %v4473_v56 = vcombine.high %v2495_v1, %v2499_v22  ;;  %v4410_v16 = vcombine.low %v2432_v4, %v2436_v5  ;;  %v2568_v22 = vld [vmem:[%s6841_s7 + $0x550] sm:$0xff] }
 0x35a   :  { %3782 = vmatprep.subr.bf16.mxu0 %v4521_v8  ;;  %v2491_v8 = vld [vmem:[%s6841_s7 + $0x2e8] sm:$0xff] }
 0x35b   :  { %3738 = vmatpush1.bf16.msra.mxu1 %v4400_v9  ;;  %v4411_v9 = vcombine.high %v2432_v4, %v2436_v5  ;;  %v4464_v20 = vcombine.low %v2487_v7, %v2491_v8  ;;  %v2504_v5 = vld [vmem:[%s6841_s7 + $0x350] sm:$0xff] }
 0x35c   :  { %3739 = vmatprep.subr.bf16.mxu1 %v4393_v14  ;;  %v2428_v14 = vld [vmem:[%s6841_s7 + $0xf0] sm:$0xff] }
 0x35d   :  { %3783 = vmatpush1.bf16.msra.mxu0 %v4520_v15  ;;  %v4465_v15 = vcombine.high %v2487_v7, %v2491_v8  ;;  %v4402_v33 = vcombine.low %v2424_v11, %v2428_v14  ;;  %v2560_v8 = vld [vmem:[%s6841_s7 + $0x510] sm:$0xff] }
 0x35e   :  { %3784 = vmatprep.subr.bf16.mxu0 %v4513_v18  ;;  %v2483_v18 = vld [vmem:[%s6841_s7 + $0x2a8] sm:$0xff] }
 0x35f   :  { %3740 = vmatpush1.bf16.msra.mxu1 %v4392_v19  ;;  %v4403_v19 = vcombine.high %v2424_v11, %v2428_v14  ;;  %v4456_v38 = vcombine.low %v2479_v17, %v2483_v18  ;;  %v2496_v14 = vld [vmem:[%s6841_s7 + $0x310] sm:$0xff] }
 0x360   :  { %3741 = vmatprep.subr.bf16.mxu1 %v4385_v26  ;;  %v2420_v26 = vld [vmem:[%s6841_s7 + $0xb0] sm:$0xff] }
 0x361   :  { %3785 = vmatpush1.bf16.msra.mxu0 %v4512_v32  ;;  %v4457_v32 = vcombine.high %v2479_v17, %v2483_v18  ;;  %v4394_v29 = vcombine.low %v2416_v21, %v2420_v26  ;;  %v2552_v18 = vld [vmem:[%s6841_s7 + $0x4d0] sm:$0xff] }
 0x362   :  { %3786 = vmatprep.subr.bf16.mxu0 %v4505_v35  ;;  %v2475_v35 = vld [vmem:[%s6841_s7 + $0x268] sm:$0xff] }
 0x363   :  { %3742 = vmatpush1.bf16.msra.mxu1 %v4384_v36  ;;  %v4395_v36 = vcombine.high %v2416_v21, %v2420_v26  ;;  %v4448_v43 = vcombine.low %v2471_v34, %v2475_v35  ;;  %v2488_v26 = vld [vmem:[%s6841_s7 + $0x2d0] sm:$0xff] }
 0x364   :  { %3743 = vmatprep.subr.bf16.mxu1 %v4377_v53  ;;  %v2412_v53 = vld [vmem:[%s6841_s7 + $0x70] sm:$0xff] }
 0x365   :  { %3787 = vmatpush1.bf16.msra.mxu0 %v4504_v28  ;;  %v4449_v28 = vcombine.high %v2471_v34, %v2475_v35  ;;  %v4386_v49 = vcombine.low %v2408_v39, %v2412_v53  ;;  %v2544_v35 = vld [vmem:[%s6841_s7 + $0x490] sm:$0xff] }
 0x366   :  { %3802 = vmatprep.subr.bf16.mxu0 %v4569_v13  ;;  %v2467_v13 = vld [vmem:[%s6841_s7 + $0x228] sm:$0xff] }
 0x367   :  { %3744 = vmatpush1.bf16.msra.mxu1 %v4376_v47  ;;  %v4387_v47 = vcombine.high %v2408_v39, %v2412_v53  ;;  %v4440_v31 = vcombine.low %v2463_v54, %v2467_v13  ;;  %v2480_v53 = vld [vmem:[%s6841_s7 + $0x290] sm:$0xff] }
 0x368   :  { %3745 = vmatprep.subr.bf16.mxu1 %v4497_v46  ;;  %v2404_v46 = vld [vmem:[%s6841_s7 + $0x30] sm:$0xff] }
 0x369   :  { %3803 = vmatpush2.bf16.msra.mxu0 %v4568_v48  ;;  %v4441_v48 = vcombine.high %v2463_v54, %v2467_v13  ;;  %v4378_v24 = vcombine.low %v2400_v44, %v2404_v46  ;;  %v2536_v13 = vld [vmem:[%s6841_s7 + $0x450] sm:$0xff] }
 0x36a   :  { %3815 = vmatprep.subr.bf16.mxu0 %v4435_v25  ;;  %v2588_v25 = vld [vmem:[%s6841_s7 + $0x5f0] sm:$0xff] }
 0x36b   :  { %3746 = vmatpush2.bf16.msra.mxu1 %v4496_v27  ;;  %v4379_v27 = vcombine.high %v2400_v44, %v2404_v46  ;;  %v4562_v61 = vcombine.low %v2584_v51, %v2588_v25  ;;  %v2472_v46 = vld [vmem:[%s6841_s7 + $0x250] sm:$0xff] }
 0x36c   :  { %3747 = vmatprep.subr.bf16.mxu1 %v4489_v58  ;;  %3805 = vmatmul.mubr.bf16.vlgmr.msra.gmra.mxu0 %v6354_v42  ;;  %v2524_v58 = vld [vmem:[%s6841_s7 + $0x3f0] sm:$0xff] }
 0x36d   :  { %3816 = vmatpush1.bf16.msra.mxu0 %v4434_v23  ;;  %3847 = vmatprep.mubr.bf16.mxu0 %v6343_v40  ;;  %v4563_v23 = vcombine.high %v2584_v51, %v2588_v25  ;;  %v4498_v1 = vcombine.low %v2520_v52, %v2524_v58  ;;  %v2528_v25 = vld [vmem:[%s6841_s7 + $0x410] sm:$0xff] }
 0x36e   :  { %3817 = vmatprep.subr.bf16.mxu0 %v4427_v59  ;;  %v2580_v59 = vld [vmem:[%s6841_s7 + $0x5b0] sm:$0xff] }
 0x36f   :  { %3748 = vmatpush2.bf16.msra.mxu1 %v4488_v60  ;;  %v4499_v60 = vcombine.high %v2520_v52, %v2524_v58  ;;  %v4554_v4 = vcombine.low %v2576_v30, %v2580_v59  ;;  %v2464_v58 = vld [vmem:[%s6841_s7 + $0x210] sm:$0xff] }
 0x370   :  { %3749 = vmatprep.subr.bf16.mxu1 %v4481_v63  ;;  %v2516_v63 = vld [vmem:[%s6841_s7 + $0x3b0] sm:$0xff] }
 0x371   :  { %3818 = vmatpush1.bf16.msra.mxu0 %v4426_v0  ;;  %v4555_v0 = vcombine.high %v2576_v30, %v2580_v59  ;;  %v4490_v7 = vcombine.low %v2512_v62, %v2516_v63  ;;  %v2592_v59 = vld [vmem:[%s6841_s7 + $0x610] sm:$0xff] }
 0x372   :  { %3819 = vmatprep.subr.bf16.mxu0 %v4419_v2  ;;  %v2572_v2 = vld [vmem:[%s6841_s7 + $0x570] sm:$0xff] }
 0x373   :  { %3750 = vmatpush2.bf16.msra.mxu1 %v4480_v3  ;;  %v4491_v3 = vcombine.high %v2512_v62, %v2516_v63  ;;  %v4546_v11 = vcombine.low %v2568_v22, %v2572_v2  ;;  %v2585_v63 = vld [vmem:[%s6841_s7 + $0x5d8] sm:$0xff] }
 0x374   :  { %3751 = vmatprep.subr.bf16.mxu1 %v4473_v56  ;;  %v2508_v56 = vld [vmem:[%s6841_s7 + $0x370] sm:$0xff] }
 0x375   :  { %3820 = vmatpush1.bf16.msra.mxu0 %v4418_v6  ;;  %v4547_v6 = vcombine.high %v2568_v22, %v2572_v2  ;;  %v4482_v17 = vcombine.low %v2504_v5, %v2508_v56  ;;  %v2457_v2 = vld [vmem:[%s6841_s7 + $0x1d8] sm:$0xff] }
 0x376   :  { %3821 = vmatprep.subr.bf16.mxu0 %v4411_v9  ;;  %v2564_v9 = vld [vmem:[%s6841_s7 + $0x530] sm:$0xff] }
 0x377   :  { %3752 = vmatpush2.bf16.msra.mxu1 %v4472_v10  ;;  %v4483_v10 = vcombine.high %v2504_v5, %v2508_v56  ;;  %v4538_v21 = vcombine.low %v2560_v8, %v2564_v9  ;;  %v2577_v56 = vld [vmem:[%s6841_s7 + $0x598] sm:$0xff] }
 0x378   :  { %3753 = vmatprep.subr.bf16.mxu1 %v4465_v15  ;;  %v2500_v15 = vld [vmem:[%s6841_s7 + $0x330] sm:$0xff] }
 0x379   :  { %3822 = vmatpush1.bf16.msra.mxu0 %v4410_v16  ;;  %v4539_v16 = vcombine.high %v2560_v8, %v2564_v9  ;;  %v4474_v34 = vcombine.low %v2496_v14, %v2500_v15  ;;  %v2449_v9 = vld [vmem:[%s6841_s7 + $0x198] sm:$0xff] }
 0x37a   :  { %3823 = vmatprep.subr.bf16.mxu0 %v4403_v19  ;;  %v2556_v19 = vld [vmem:[%s6841_s7 + $0x4f0] sm:$0xff] }
 0x37b   :  { %3754 = vmatpush2.bf16.msra.mxu1 %v4464_v20  ;;  %v4475_v20 = vcombine.high %v2496_v14, %v2500_v15  ;;  %v4530_v39 = vcombine.low %v2552_v18, %v2556_v19  ;;  %v2569_v15 = vld [vmem:[%s6841_s7 + $0x558] sm:$0xff] }
 0x37c   :  { %3755 = vmatprep.subr.bf16.mxu1 %v4457_v32  ;;  %v2492_v32 = vld [vmem:[%s6841_s7 + $0x2f0] sm:$0xff] }
 0x37d   :  { %3824 = vmatpush1.bf16.msra.mxu0 %v4402_v33  ;;  %v4531_v33 = vcombine.high %v2552_v18, %v2556_v19  ;;  %v4466_v54 = vcombine.low %v2488_v26, %v2492_v32  ;;  %v2441_v19 = vld [vmem:[%s6841_s7 + $0x158] sm:$0xff] }
 0x37e   :  { %3825 = vmatprep.subr.bf16.mxu0 %v4395_v36  ;;  %v2548_v36 = vld [vmem:[%s6841_s7 + $0x4b0] sm:$0xff] }
 0x37f   :  { %3756 = vmatpush2.bf16.msra.mxu1 %v4456_v38  ;;  %v4467_v38 = vcombine.high %v2488_v26, %v2492_v32  ;;  %v4522_v44 = vcombine.low %v2544_v35, %v2548_v36  ;;  %v2565_v32 = vld [vmem:[%s6841_s7 + $0x538] sm:$0xff] }
 0x380   :  { %3757 = vmatprep.subr.bf16.mxu1 %v4449_v28  ;;  %v2484_v28 = vld [vmem:[%s6841_s7 + $0x2b0] sm:$0xff] }
 0x381   :  { %3826 = vmatpush1.bf16.msra.mxu0 %v4394_v29  ;;  %v4523_v29 = vcombine.high %v2544_v35, %v2548_v36  ;;  %v4458_v51 = vcombine.low %v2480_v53, %v2484_v28  ;;  %v2433_v35 = vld [vmem:[%s6841_s7 + $0x118] sm:$0xff] }
 0x382   :  { %3827 = vmatprep.subr.bf16.mxu0 %v4387_v47  ;;  %v2540_v47 = vld [vmem:[%s6841_s7 + $0x470] sm:$0xff] }
 0x383   :  { %3758 = vmatpush2.bf16.msra.mxu1 %v4448_v43  ;;  %v4459_v43 = vcombine.high %v2480_v53, %v2484_v28  ;;  %v4514_v52 = vcombine.low %v2536_v13, %v2540_v47  ;;  %v2557_v53 = vld [vmem:[%s6841_s7 + $0x4f8] sm:$0xff] }
 0x384   :  { %3759 = vmatprep.subr.bf16.mxu1 %v4441_v48  ;;  %v2476_v48 = vld [vmem:[%s6841_s7 + $0x270] sm:$0xff] }
 0x385   :  { %3828 = vmatpush1.bf16.msra.mxu0 %v4386_v49  ;;  %v4515_v49 = vcombine.high %v2536_v13, %v2540_v47  ;;  %v4450_v30 = vcombine.low %v2472_v46, %v2476_v48  ;;  %v2429_v13 = vld [vmem:[%s6841_s7 + $0xf8] sm:$0xff] }
 0x386   :  { %3829 = vmatprep.subr.bf16.mxu0 %v4379_v27  ;;  %v2532_v27 = vld [vmem:[%s6841_s7 + $0x430] sm:$0xff] }
 0x387   :  { %3760 = vmatpush2.bf16.msra.mxu1 %v4440_v31  ;;  %v4451_v31 = vcombine.high %v2472_v46, %v2476_v48  ;;  %v4506_v62 = vcombine.low %v2528_v25, %v2532_v27  ;;  %v2549_v46 = vld [vmem:[%s6841_s7 + $0x4b8] sm:$0xff] }
 0x388   :  { %3858 = vmatprep.subr.bf16.mxu1 %v4563_v23  ;;  %v2468_v23 = vld [vmem:[%s6841_s7 + $0x230] sm:$0xff] }
 0x389   :  { %3830 = vmatpush1.bf16.msra.mxu0 %v4378_v24  ;;  %v4507_v24 = vcombine.high %v2528_v25, %v2532_v27  ;;  %v4442_v22 = vcombine.low %v2464_v58, %v2468_v23  ;;  %v2421_v25 = vld [vmem:[%s6841_s7 + $0xb8] sm:$0xff] }
 0x38a   :  { %3762 = vmatmul.mubr.bf16.vlgmr.msra.gmra.mxu1 %v6338_v37  ;;  %3831 = vmatprep.subr.bf16.mxu0 %v4499_v60  ;;  %v2596_v60 = vld [vmem:[%s6841_s7 + $0x630] sm:$0xff] }
 0x38b   :  { %3859 = vmatpush1.bf16.msra.mxu1 %v4562_v61  ;;  %4576 = vmatprep.mubr.msk.bf16.mxu1 %vm2181_vm0, %v6357_v45  ;;  %v4443_v61 = vcombine.high %v2464_v58, %v2468_v23  ;;  %v4570_v5 = vcombine.low %v2592_v59, %v2596_v60  ;;  %v2541_v58 = vld [vmem:[%s6841_s7 + $0x478] sm:$0xff] }
 0x38c   :  { %3860 = vmatprep.subr.bf16.mxu1 %v4555_v0  ;;  %v2589_v0 = vld [vmem:[%s6841_s7 + $0x5f8] sm:$0xff] }
 0x38d   :  { %3832 = vmatpush2.bf16.msra.mxu0 %v4498_v1  ;;  %v4571_v1 = vcombine.high %v2592_v59, %v2596_v60  ;;  %v4564_v8 = vcombine.low %v2585_v63, %v2589_v0  ;;  %v2413_v59 = vld [vmem:[%s6841_s7 + $0x78] sm:$0xff] }
 0x38e   :  { %3833 = vmatprep.subr.bf16.mxu0 %v4491_v3  ;;  %v2461_v3 = vld [vmem:[%s6841_s7 + $0x1f8] sm:$0xff] }
 0x38f   :  { %3861 = vmatpush1.bf16.msra.mxu1 %v4554_v4  ;;  %v4565_v4 = vcombine.high %v2585_v63, %v2589_v0  ;;  %v4436_v14 = vcombine.low %v2457_v2, %v2461_v3  ;;  %v2533_v63 = vld [vmem:[%s6841_s7 + $0x438] sm:$0xff] }
 0x390   :  { %3862 = vmatprep.subr.bf16.mxu1 %v4547_v6  ;;  %v2581_v6 = vld [vmem:[%s6841_s7 + $0x5b8] sm:$0xff] }
 0x391   :  { %3834 = vmatpush2.bf16.msra.mxu0 %v4490_v7  ;;  %v4437_v7 = vcombine.high %v2457_v2, %v2461_v3  ;;  %v4556_v18 = vcombine.low %v2577_v56, %v2581_v6  ;;  %v2405_v2 = vld [vmem:[%s6841_s7 + $0x38] sm:$0xff] }
 0x392   :  { %3835 = vmatprep.subr.bf16.mxu0 %v4483_v10  ;;  %v2453_v10 = vld [vmem:[%s6841_s7 + $0x1b8] sm:$0xff] }
 0x393   :  { %3863 = vmatpush1.bf16.msra.mxu1 %v4546_v11  ;;  %v4557_v11 = vcombine.high %v2577_v56, %v2581_v6  ;;  %v4428_v26 = vcombine.low %v2449_v9, %v2453_v10  ;;  %v2597_v56 = vld [vmem:[%s6841_s7 + $0x638] sm:$0xff] }
 0x394   :  { %3864 = vmatprep.subr.bf16.mxu1 %v4539_v16  ;;  %v2573_v16 = vld [vmem:[%s6841_s7 + $0x578] sm:$0xff] }
 0x395   :  { %3836 = vmatpush2.bf16.msra.mxu0 %v4482_v17  ;;  %v4429_v17 = vcombine.high %v2449_v9, %v2453_v10  ;;  %v2525_v9 = vld [vmem:[%s6841_s7 + $0x3f8] sm:$0xff] }
 0x396   :  { %3837 = vmatprep.subr.bf16.mxu0 %v4475_v20  ;;  %v2445_v20 = vld [vmem:[%s6841_s7 + $0x178] sm:$0xff] }
 0x397   :  { %3865 = vmatpush1.bf16.msra.mxu1 %v4538_v21  ;;  %v4549_v21 = vcombine.high %v2569_v15, %v2573_v16 }
 0x398   :  { %3866 = vmatprep.subr.bf16.mxu1 %v4531_v33  ;;  %v4421_v33 = vcombine.high %v2441_v19, %v2445_v20 }
 0x399   :  { %3838 = vmatpush2.bf16.msra.mxu0 %v4474_v34  ;;  %v4548_v34 = vcombine.low %v2569_v15, %v2573_v16  ;;  %v2513_v16 = vld [vmem:[%s6841_s7 + $0x398] sm:$0xff] }
 0x39a   :  { %3839 = vmatprep.subr.bf16.mxu0 %v4467_v38  ;;  %v4420_v38 = vcombine.low %v2441_v19, %v2445_v20  ;;  %v2505_v20 = vld [vmem:[%s6841_s7 + $0x358] sm:$0xff] }
 0x39b   :  { %3867 = vmatpush1.bf16.msra.mxu1 %v4530_v39  ;;  %v2553_v39 = vld [vmem:[%s6841_s7 + $0x4d8] sm:$0xff] }
 0x39c   :  { %3868 = vmatprep.subr.bf16.mxu1 %v4523_v29  ;;  %v4533_v47 = vcombine.high %v2553_v39, %v2557_v53 }
 0x39d   :  { %3840 = vmatpush2.bf16.msra.mxu0 %v4466_v54  ;;  %v2425_v54 = vld [vmem:[%s6841_s7 + $0xd8] sm:$0xff] }
 0x39e   :  { %3841 = vmatprep.subr.bf16.mxu0 %v4459_v43  ;;  %v4405_v48 = vcombine.high %v2425_v54, %v2429_v13 }
 0x39f   :  { %3869 = vmatpush1.bf16.msra.mxu1 %v4522_v44  ;;  %v2545_v44 = vld [vmem:[%s6841_s7 + $0x498] sm:$0xff] }
 0x3a0   :  { %3870 = vmatprep.subr.bf16.mxu1 %v4515_v49  ;;  %v4532_v49 = vcombine.low %v2553_v39, %v2557_v53  ;;  %v4525_v27 = vcombine.high %v2545_v44, %v2549_v46  ;;  %v2481_v39 = vld [vmem:[%s6841_s7 + $0x298] sm:$0xff] }
 0x3a1   :  { %3842 = vmatpush2.bf16.msra.mxu0 %v4458_v51  ;;  %v2417_v51 = vld [vmem:[%s6841_s7 + $0x98] sm:$0xff] }
 0x3a2   :  { %3843 = vmatprep.subr.bf16.mxu0 %v4451_v31  ;;  %v4404_v31 = vcombine.low %v2425_v54, %v2429_v13  ;;  %v4397_v23 = vcombine.high %v2417_v51, %v2421_v25  ;;  %v2485_v53 = vld [vmem:[%s6841_s7 + $0x2b8] sm:$0xff] }
 0x3a3   :  { %3871 = vmatpush1.bf16.msra.mxu1 %v4514_v52  ;;  %v2537_v52 = vld [vmem:[%s6841_s7 + $0x458] sm:$0xff] }
 0x3a4   :  { %3872 = vmatprep.subr.bf16.mxu1 %v4507_v24  ;;  %v4524_v24 = vcombine.low %v2545_v44, %v2549_v46  ;;  %v4517_v60 = vcombine.high %v2537_v52, %v2541_v58  ;;  %v2473_v54 = vld [vmem:[%s6841_s7 + $0x258] sm:$0xff] }
 0x3a5   :  { %3844 = vmatpush2.bf16.msra.mxu0 %v4450_v30  ;;  %v2409_v30 = vld [vmem:[%s6841_s7 + $0x58] sm:$0xff] }
 0x3a6   :  { %3845 = vmatprep.subr.bf16.mxu0 %v4443_v61  ;;  %v4396_v61 = vcombine.low %v2417_v51, %v2421_v25  ;;  %v4389_v0 = vcombine.high %v2409_v30, %v2413_v59  ;;  %v2477_v13 = vld [vmem:[%s6841_s7 + $0x278] sm:$0xff]  ;;  %v6813_v25 = vld [vmem:[%s6842_s8] sm:$0xff] }
 0x3a7   :  { %3873 = vmatpush1.bf16.msra.mxu1 %v4506_v62  ;;  %v2529_v62 = vld [vmem:[%s6841_s7 + $0x418] sm:$0xff] }
 0x3a8   :  { %3888 = vmatprep.subr.bf16.mxu1 %v4571_v1  ;;  %v4516_v1 = vcombine.low %v2537_v52, %v2541_v58  ;;  %v4509_v3 = vcombine.high %v2529_v62, %v2533_v63  ;;  %v2465_v44 = vld [vmem:[%s6841_s7 + $0x218] sm:$0xff] }
 0x3a9   :  { %3846 = vmatpush2.bf16.msra.mxu0 %v4442_v22  ;;  %v2401_v22 = vld [vmem:[%s6841_s7 + $0x18] sm:$0xff] }
 0x3aa   :  { %3944 = vmatprep.subr.bf16.mxu0 %v4565_v4  ;;  %v4388_v4 = vcombine.low %v2409_v30, %v2413_v59  ;;  %v4381_v6 = vcombine.high %v2401_v22, %v2405_v2  ;;  %v2469_v46 = vld [vmem:[%s6841_s7 + $0x238] sm:$0xff] }
 0x3ab   :  { %3889 = vmatpush2.bf16.msra.mxu1 %v4570_v5  ;;  %v2593_v5 = vld [vmem:[%s6841_s7 + $0x618] sm:$0xff]  ;;  %v4444_v51 = vcombine.low %v2465_v44, %v2469_v46 }
 0x3ac   :  { %3848 = vmatmul.mubr.bf16.vlgmr.msra.gmra.mxu0 %v6338_v37  ;;  %3901 = vmatprep.subr.bf16.mxu1 %v4437_v7  ;;  %v4508_v7 = vcombine.low %v2529_v62, %v2533_v63  ;;  %v4573_v10 = vcombine.high %v2593_v5, %v2597_v56  ;;  %v4572_v15 = vcombine.low %v2593_v5, %v2597_v56 }
 0x3ad   :  { %3945 = vmatpush1.bf16.msra.mxu0 %v4564_v8  ;;  %4577 = vmatprep.mubr.msk.bf16.mxu0 %vm2181_vm0, %v6357_v45  ;;  %v2561_v45 = vld [vmem:[%s6841_s7 + $0x518] sm:$0xff] }
 0x3ae   :  { %3891 = vmatmul.mubr.bf16.vlgmr.msra.gmra.mxu1 %v6354_v42  ;;  %3946 = vmatprep.subr.bf16.mxu0 %v4557_v11  ;;  %v4541_v36 = vcombine.high %v2561_v45, %v2565_v32  ;;  %v4540_v29 = vcombine.low %v2561_v45, %v2565_v32  ;;  %v2521_v8 = vld [vmem:[%s6841_s7 + $0x3d8] sm:$0xff]  ;;  %v4380_v11 = vcombine.low %v2401_v22, %v2405_v2 }
 0x3af   :  { %3902 = vmatpush1.bf16.msra.mxu1 %v4436_v14  ;;  %3933 = vmatprep.mubr.bf16.mxu1 %v6343_v40  ;;  %v2437_v40 = vld [vmem:[%s6841_s7 + $0x138] sm:$0xff]  ;;  %v4501_v14 = vcombine.high %v2521_v8, %v2525_v9 }
 0x3b0   :  { %3903 = vmatprep.subr.bf16.mxu1 %v4429_v17  ;;  %v4413_v28 = vcombine.high %v2433_v35, %v2437_v40  ;;  %v4412_v43 = vcombine.low %v2433_v35, %v2437_v40  ;;  %v2517_v17 = vld [vmem:[%s6841_s7 + $0x3b8] sm:$0xff] }
 0x3b1   :  { %3947 = vmatpush1.bf16.msra.mxu0 %v4556_v18  ;;  %v4500_v18 = vcombine.low %v2521_v8, %v2525_v9  ;;  %v4493_v19 = vcombine.high %v2513_v16, %v2517_v17  ;;  %v2497_v32 = vld [vmem:[%s6841_s7 + $0x318] sm:$0xff] }
 0x3b2   :  { %3948 = vmatprep.subr.bf16.mxu0 %v4549_v21  ;;  %v2509_v21 = vld [vmem:[%s6841_s7 + $0x378] sm:$0xff] }
 0x3b3   :  { %3904 = vmatpush1.bf16.msra.mxu1 %v4428_v26  ;;  %v4492_v26 = vcombine.low %v2513_v16, %v2517_v17  ;;  %v4485_v45 = vcombine.high %v2505_v20, %v2509_v21  ;;  %v2489_v40 = vld [vmem:[%s6841_s7 + $0x2d8] sm:$0xff] }
 0x3b4   :  { %3905 = vmatprep.subr.bf16.mxu1 %v4421_v33  ;;  %v2501_v33 = vld [vmem:[%s6841_s7 + $0x338] sm:$0xff] }
 0x3b5   :  { %3949 = vmatpush1.bf16.msra.mxu0 %v4548_v34  ;;  %v4484_v34 = vcombine.low %v2505_v20, %v2509_v21  ;;  %v4477_v35 = vcombine.high %v2497_v32, %v2501_v33  ;;  %v2611_v20 = vrot.slane %v6813_v25, %v6121_v41  ;;  %v2615_v21 = vrot.slane %v6813_v25, %v6118_v12 }
 0x3b6   :  { %3950 = vmatprep.subr.bf16.mxu0 %v4541_v36  ;;  %v4476_v36 = vcombine.low %v2497_v32, %v2501_v33 }
 0x3b7   :  { %3906 = vmatpush1.bf16.msra.mxu1 %v4420_v38 }
 0x3b8   :  { %3907 = vmatprep.subr.bf16.mxu1 %v4413_v28 }
 0x3b9   :  { %3951 = vmatpush1.bf16.msra.mxu0 %v4540_v29  ;;  %v4461_v29 = vcombine.high %v2481_v39, %v2485_v53 }
 0x3ba   :  { %3952 = vmatprep.subr.bf16.mxu0 %v4533_v47  ;;  %v4460_v47 = vcombine.low %v2481_v39, %v2485_v53 }
 0x3bb   :  { %3908 = vmatpush1.bf16.msra.mxu1 %v4412_v43  ;;  %v4453_v43 = vcombine.high %v2473_v54, %v2477_v13 }
 0x3bc   :  { %3909 = vmatprep.subr.bf16.mxu1 %v4405_v48  ;;  %v4452_v48 = vcombine.low %v2473_v54, %v2477_v13 }
 0x3bd   :  { %3953 = vmatpush1.bf16.msra.mxu0 %v4532_v49  ;;  %v4445_v49 = vcombine.high %v2465_v44, %v2469_v46 }
 0x3be   :  { %3954 = vmatprep.subr.bf16.mxu0 %v4525_v27  ;;  %v2603_v27 = vrot.slane %v6813_v25, %v6084_v57 }
 0x3bf   :  { %3910 = vmatpush1.bf16.msra.mxu1 %v4404_v31  ;;  %v2607_v31 = vrot.slane %v6813_v25, %v6076_v55 }
 0x3c0   :  { %3911 = vmatprep.subr.bf16.mxu1 %v4397_v23 }
 0x3c1   :  { %3955 = vmatpush1.bf16.msra.mxu0 %v4524_v24 }
 0x3c2   :  { %3956 = vmatprep.subr.bf16.mxu0 %v4517_v60 }
 0x3c3   :  { %3912 = vmatpush1.bf16.msra.mxu1 %v4396_v61 }
 0x3c4   :  { %3913 = vmatprep.subr.bf16.mxu1 %v4389_v0 }
 0x3c5   :  { %3957 = vmatpush1.bf16.msra.mxu0 %v4516_v1 }
 0x3c6   :  { %3958 = vmatprep.subr.bf16.mxu0 %v4509_v3 }
 0x3c7   :  { %3914 = vmatpush1.bf16.msra.mxu1 %v4388_v4 }
 0x3c8   :  { %3915 = vmatprep.subr.bf16.mxu1 %v4381_v6 }
 0x3c9   :  { %3959 = vmatpush1.bf16.msra.mxu0 %v4508_v7 }
 0x3ca   :  { %3974 = vmatprep.subr.bf16.mxu0 %v4573_v10 }
 0x3cb   :  { %3916 = vmatpush1.bf16.msra.mxu1 %v4380_v11 }
 0x3cc   :  { %3917 = vmatprep.subr.bf16.mxu1 %v4501_v14 }
 0x3cd   :  { %3975 = vmatpush2.bf16.msra.mxu0 %v4572_v15 }
 0x3cf   :  { %3918 = vmatpush2.bf16.msra.mxu1 %v4500_v18 }
 0x3d0   :  { %3919 = vmatprep.subr.bf16.mxu1 %v4493_v19  ;;  %3977 = vmatmul.mubr.bf16.vlgmr.msra.gmra.mxu0 %v6354_v42  ;;  %v2493_v42 = vld [vmem:[%s6841_s7 + $0x2f8] sm:$0xff]  ;;  %s5109_s7 = smov [#allocation2]  }
 0x3d1   :  { %v4469_v38 = vcombine.high %v2489_v40, %v2493_v42  ;;  %v4468_v28 = vcombine.low %v2489_v40, %v2493_v42  ;;  %s4077_s8 = sshll.u32 %s5109_s7, 4  ;;  %s4078_s8 = int_to_ptr.vmem [resolvable:$true] %s4077_s8 }
 0x3d2   :  { %s5085_s15 = scalar_lea.vmem %s4078_s8, 2048  ;;  %p5090_p1 = scmp.lt.s32.totalorder %s4078_s8, %s4078_s8 }
 0x3d3   :  { %3920 = vmatpush2.bf16.msra.mxu1 %v4492_v26  ;;  %p5086_p0 = scmp.ne.s32.totalorder %s4078_s8, %s5085_s15  ;;  %p5091_p2 = scmp.lt.s32.totalorder %s5085_s15, %s5085_s15 }
 0x3d4   :  { %3921 = vmatprep.subr.bf16.mxu1 %v4485_v45 }
 0x3d5   :  { %p5092_p3 = por %p5091_p2, %p5090_p1 }
 0x3d7   :  { %3922 = vmatpush2.bf16.msra.mxu1 %v4484_v34  ;;  %p5093_p4 = pnand %p5092_p3, %p5086_p0 }
 0x3d8   :  { %3923 = vmatprep.subr.bf16.mxu1 %v4477_v35 }
 0x3db   :  { %3924 = vmatpush2.bf16.msra.mxu1 %v4476_v36 }
 0x3dc   :  { %3925 = vmatprep.subr.bf16.mxu1 %v4469_v38 }
 0x3df   :  { %3926 = vmatpush2.bf16.msra.mxu1 %v4468_v28 }
 0x3e0   :  { %3927 = vmatprep.subr.bf16.mxu1 %v4461_v29 }
 0x3e3   :  { %3928 = vmatpush2.bf16.msra.mxu1 %v4460_v47 }
 0x3e4   :  { %3929 = vmatprep.subr.bf16.mxu1 %v4453_v43 }
 0x3e7   :  { %3930 = vmatpush2.bf16.msra.mxu1 %v4452_v48 }
 0x3e8   :  { %3931 = vmatprep.subr.bf16.mxu1 %v4445_v49 }
 0x3eb   :  { %3932 = vmatpush2.bf16.msra.mxu1 %v4444_v51 }
 0x3ee   :  { %3934 = vmatmul.mubr.bf16.vlgmr.msra.gmra.mxu1 %v6338_v37 }
 0x408   :  { %v3677_v52 = vpop.f32.mrf.mxu0 }
 0x409   :  { %v3678_v58 = vadd.f32 %v3677_v52, %v2603_v27 }
 0x40a   :  { %v3720_v23 = vpop.f32.mrf.mxu1  ;;  %v3679_v24 = vpop.f32.mrf.mxu0 }
 0x40b   :  { %v3721_v30 = vadd.f32 %v3720_v23, %v3678_v58  ;;  %v3680_v59 = vadd.f32 %v3679_v24, %v2607_v31  ;;  %v2618_v24 = vsub.s32 4, %v6073_v50 }
 0x40c   :  { %v3722_v60 = vpop.f32.mrf.mxu1  ;;  %v3681_v61 = vpop.f32.mrf.mxu0 }
 0x40d   :  { %v3987_v37 = vmul.f32 0.5, %v3721_v30  ;;  %v3723_v62 = vadd.f32 %v3722_v60, %v3680_v59  ;;  %v3682_v63 = vadd.f32 %v3681_v61, %v2603_v27  ;;  %v2622_v59 = vsub.s32 5, %v6073_v50 }
 0x40e   :  { %v3724_v0 = vpop.f32.mrf.mxu1  ;;  %v3683_v1 = vpop.f32.mrf.mxu0  ;;  %v2619_v60 = vrot.slane %v6813_v25, %v2618_v24 }
 0x40f   :  { %5053 = vtanh.f32 %v3987_v37  ;;  %v3988_v22 = vmul.f32 0.5, %v3723_v62  ;;  %v3725_v2 = vadd.f32 %v3724_v0, %v3682_v63  ;;  %v3684_v57 = vadd.f32 %v3683_v1, %v2607_v31 }
 0x410   :  { %v3726_v3 = vpop.f32.mrf.mxu1  ;;  %v2623_v61 = vrot.slane %v6813_v25, %v2622_v59 }
 0x411   :  { %5055 = vtanh.f32 %v3988_v22  ;;  %v3995_v55 = vmul.f32 0.5, %v3725_v2  ;;  %v3727_v4 = vadd.f32 %v3726_v3, %v3684_v57 }
 0x413   :  { %5057 = vtanh.f32 %v3995_v55  ;;  %v3996_v5 = vmul.f32 0.5, %v3727_v4 }
 0x415   :  { %5059 = vtanh.f32 %v3996_v5 }
 0x41c   :  { %v5054_v56 = vpop.eup %5053 }
 0x41d   :  { %v4019_v6 = vadd.f32 1.0, %v5054_v56 }
 0x41e   :  { %v5056_v7 = vpop.eup %5055 }
 0x41f   :  { %v4035_v8 = vmul.f32 0.5, %v4019_v6  ;;  %v4020_v9 = vadd.f32 1.0, %v5056_v7 }
 0x420   :  { %v5058_v10 = vpop.eup %5057 }
 0x421   :  { %4054 = vst [vmem:[#allocation2] sm:$0xff] %v4035_v8  ;;  %v4036_v11 = vmul.f32 0.5, %v4020_v9  ;;  %v4027_v14 = vadd.f32 1.0, %v5058_v10 }
 0x422   :  { %v5060_v15 = vpop.eup %5059 }
 0x423   :  { %4055 = vst [vmem:[#allocation2 + $0x8] sm:$0xff] %v4036_v11  ;;  %v4043_v16 = vmul.f32 0.5, %v4027_v14  ;;  %v4028_v17 = vadd.f32 1.0, %v5060_v15 }
 0x425   :  { %4062 = vst [vmem:[#allocation2 + $0x40] sm:$0xff] %v4043_v16  ;;  %v4044_v18 = vmul.f32 0.5, %v4028_v17 }
 0x427   :  { %4063 = vst [vmem:[#allocation2 + $0x48] sm:$0xff] %v4044_v18 }
 0x42c   :  { %v3806_v19 = vpop.f32.mrf.mxu0 }
 0x42e   :  { %v3808_v26 = vpop.f32.mrf.mxu0 }
 0x430   :  { %v3810_v40 = vpop.f32.mrf.mxu0 }
 0x432   :  { %v3812_v41 = vpop.f32.mrf.mxu0 }
 0x44a   :  { %v3763_v45 = vpop.f32.mrf.mxu1 }
 0x44b   :  { %v3764_v32 = vadd.f32 %v3763_v45, %v2611_v20 }
 0x44c   :  { %v3765_v33 = vpop.f32.mrf.mxu1 }
 0x44d   :  { %v3807_v34 = vadd.f32 %v3806_v19, %v3764_v32  ;;  %v3766_v35 = vadd.f32 %v3765_v33, %v2615_v21 }
 0x44e   :  { %v3767_v42 = vpop.f32.mrf.mxu1 }
 0x44f   :  { %v3989_v36 = vmul.f32 0.5, %v3807_v34  ;;  %v3809_v38 = vadd.f32 %v3808_v26, %v3766_v35  ;;  %v3768_v39 = vadd.f32 %v3767_v42, %v2611_v20  ;;  %v2626_v35 = vsub.s32 6, %v6073_v50 }
 0x450   :  { %v3769_v53 = vpop.f32.mrf.mxu1 }
 0x451   :  { %5061 = vtanh.f32 %v3989_v36  ;;  %v3990_v28 = vmul.f32 0.5, %v3809_v38  ;;  %v3811_v29 = vadd.f32 %v3810_v40, %v3768_v39  ;;  %v3770_v54 = vadd.f32 %v3769_v53, %v2615_v21 }
 0x452   :  { %v2630_v40 = vsub.s32 7, %v6073_v50  ;;  %v2627_v36 = vrot.slane %v6813_v25, %v2626_v35 }
 0x453   :  { %5063 = vtanh.f32 %v3990_v28  ;;  %v3997_v13 = vmul.f32 0.5, %v3811_v29  ;;  %v3813_v12 = vadd.f32 %v3812_v41, %v3770_v54 }
 0x454   :  { %v2631_v38 = vrot.slane %v6813_v25, %v2630_v40 }
 0x455   :  { %5065 = vtanh.f32 %v3997_v13  ;;  %v3998_v47 = vmul.f32 0.5, %v3813_v12 }
 0x457   :  { %5067 = vtanh.f32 %v3998_v47 }
 0x45e   :  { %v5062_v43 = vpop.eup %5061 }
 0x45f   :  { %v4021_v44 = vadd.f32 1.0, %v5062_v43 }
 0x460   :  { %v5064_v46 = vpop.eup %5063 }
 0x461   :  { %v4037_v48 = vmul.f32 0.5, %v4021_v44  ;;  %v4022_v49 = vadd.f32 1.0, %v5064_v46 }
 0x462   :  { %v5066_v51 = vpop.eup %5065 }
 0x463   :  { %4056 = vst [vmem:[#allocation2 + $0x10] sm:$0xff] %v4037_v48  ;;  %v4038_v27 = vmul.f32 0.5, %v4022_v49  ;;  %v4029_v31 = vadd.f32 1.0, %v5066_v51 }
 0x464   :  { %v5068_v52 = vpop.eup %5067 }
 0x465   :  { %4057 = vst [vmem:[#allocation2 + $0x18] sm:$0xff] %v4038_v27  ;;  %v4045_v58 = vmul.f32 0.5, %v4029_v31  ;;  %v4030_v23 = vadd.f32 1.0, %v5068_v52 }
 0x467   :  { %4064 = vst [vmem:[#allocation2 + $0x50] sm:$0xff] %v4045_v58  ;;  %v4046_v30 = vmul.f32 0.5, %v4030_v23 }
 0x469   :  { %4065 = vst [vmem:[#allocation2 + $0x58] sm:$0xff] %v4046_v30 }
 0x46c   :  { %v3849_v37 = vpop.f32.mrf.mxu0 }
 0x46d   :  { %v3850_v62 = vadd.f32 %v3849_v37, %v2619_v60 }
 0x46e   :  { %v3892_v63 = vpop.f32.mrf.mxu1  ;;  %v3851_v0 = vpop.f32.mrf.mxu0 }
 0x46f   :  { %v3893_v1 = vadd.f32 %v3892_v63, %v3850_v62  ;;  %v3852_v22 = vadd.f32 %v3851_v0, %v2623_v61 }
 0x470   :  { %v3894_v2 = vpop.f32.mrf.mxu1  ;;  %v3853_v57 = vpop.f32.mrf.mxu0 }
 0x471   :  { %v3991_v3 = vmul.f32 0.5, %v3893_v1  ;;  %v3895_v55 = vadd.f32 %v3894_v2, %v3852_v22  ;;  %v3854_v4 = vadd.f32 %v3853_v57, %v2619_v60 }
 0x472   :  { %v3896_v5 = vpop.f32.mrf.mxu1  ;;  %v3855_v56 = vpop.f32.mrf.mxu0 }
 0x473   :  { %5069 = vtanh.f32 %v3991_v3  ;;  %v3992_v6 = vmul.f32 0.5, %v3895_v55  ;;  %v3897_v7 = vadd.f32 %v3896_v5, %v3854_v4  ;;  %v3856_v8 = vadd.f32 %v3855_v56, %v2623_v61 }
 0x474   :  { %v3898_v9 = vpop.f32.mrf.mxu1 }
 0x475   :  { %5071 = vtanh.f32 %v3992_v6  ;;  %v3999_v10 = vmul.f32 0.5, %v3897_v7  ;;  %v3899_v11 = vadd.f32 %v3898_v9, %v3856_v8 }
 0x477   :  { %5073 = vtanh.f32 %v3999_v10  ;;  %v4000_v14 = vmul.f32 0.5, %v3899_v11 }
 0x479   :  { %5075 = vtanh.f32 %v4000_v14 }
 0x480   :  { %v5070_v15 = vpop.eup %5069 }
 0x481   :  { %v4023_v16 = vadd.f32 1.0, %v5070_v15 }
 0x482   :  { %v5072_v17 = vpop.eup %5071 }
 0x483   :  { %v4039_v18 = vmul.f32 0.5, %v4023_v16  ;;  %v4024_v19 = vadd.f32 1.0, %v5072_v17 }
 0x484   :  { %v5074_v20 = vpop.eup %5073 }
 0x485   :  { %4058 = vst [vmem:[#allocation2 + $0x20] sm:$0xff] %v4039_v18  ;;  %v4040_v21 = vmul.f32 0.5, %v4024_v19  ;;  %v4031_v26 = vadd.f32 1.0, %v5074_v20 }
 0x486   :  { %v5076_v45 = vpop.eup %5075 }
 0x487   :  { %4059 = vst [vmem:[#allocation2 + $0x28] sm:$0xff] %v4040_v21  ;;  %v4047_v32 = vmul.f32 0.5, %v4031_v26  ;;  %v4032_v33 = vadd.f32 1.0, %v5076_v45 }
 0x489   :  { %4066 = vst [vmem:[#allocation2 + $0x60] sm:$0xff] %v4047_v32  ;;  %v4048_v34 = vmul.f32 0.5, %v4032_v33 }
 0x48b   :  { %4067 = vst [vmem:[#allocation2 + $0x68] sm:$0xff] %v4048_v34 }
 0x490   :  { %v3978_v42 = vpop.f32.mrf.mxu0 }
 0x492   :  { %v3980_v39 = vpop.f32.mrf.mxu0 }
 0x494   :  { %v3982_v13 = vpop.f32.mrf.mxu0 }
 0x496   :  { %v3984_v51 = vpop.f32.mrf.mxu0 }
 0x4ae   :  { %v3935_v53 = vpop.f32.mrf.mxu1 }
 0x4af   :  { %v3936_v28 = vadd.f32 %v3935_v53, %v2627_v36 }
 0x4b0   :  { %v3937_v29 = vpop.f32.mrf.mxu1 }
 0x4b1   :  { %v3979_v54 = vadd.f32 %v3978_v42, %v3936_v28  ;;  %v3938_v41 = vadd.f32 %v3937_v29, %v2631_v38 }
 0x4b2   :  { %v3939_v12 = vpop.f32.mrf.mxu1 }
 0x4b3   :  { %v3993_v47 = vmul.f32 0.5, %v3979_v54  ;;  %v3981_v43 = vadd.f32 %v3980_v39, %v3938_v41  ;;  %v3940_v44 = vadd.f32 %v3939_v12, %v2627_v36 }
 0x4b4   :  { %v3941_v46 = vpop.f32.mrf.mxu1 }
 0x4b5   :  { %5077 = vtanh.f32 %v3993_v47  ;;  %v3994_v48 = vmul.f32 0.5, %v3981_v43  ;;  %v3983_v50 = vadd.f32 %v3982_v13, %v3940_v44  ;;  %v3942_v49 = vadd.f32 %v3941_v46, %v2631_v38 }
 0x4b7   :  { %5079 = vtanh.f32 %v3994_v48  ;;  %v4001_v27 = vmul.f32 0.5, %v3983_v50  ;;  %v3985_v25 = vadd.f32 %v3984_v51, %v3942_v49 }
 0x4b9   :  { %5081 = vtanh.f32 %v4001_v27  ;;  %v4002_v31 = vmul.f32 0.5, %v3985_v25 }
 0x4bb   :  { %5083 = vtanh.f32 %v4002_v31 }
 0x4c2   :  { %v5078_v52 = vpop.eup %5077 }
 0x4c3   :  { %v4025_v58 = vadd.f32 1.0, %v5078_v52 }
 0x4c4   :  { %v5080_v23 = vpop.eup %5079 }
 0x4c5   :  { %v4041_v24 = vmul.f32 0.5, %v4025_v58  ;;  %v4026_v30 = vadd.f32 1.0, %v5080_v23 }
 0x4c6   :  { %v5082_v59 = vpop.eup %5081 }
 0x4c7   :  { %4060 = vst [vmem:[#allocation2 + $0x30] sm:$0xff] %v4041_v24  ;;  %v4042_v60 = vmul.f32 0.5, %v4026_v30  ;;  %v4033_v61 = vadd.f32 1.0, %v5082_v59 }
 0x4c8   :  { %v5084_v37 = vpop.eup %5083 }
 0x4c9   :  { %4061 = vst [vmem:[#allocation2 + $0x38] sm:$0xff] %v4042_v60  ;;  %v4049_v62 = vmul.f32 0.5, %v4033_v61  ;;  %v4034_v63 = vadd.f32 1.0, %v5084_v37 }
 0x4cb   :  { %4068 = vst [vmem:[#allocation2 + $0x70] sm:$0xff] %v4049_v62  ;;  %v4050_v0 = vmul.f32 0.5, %v4034_v63 }
 0x4cd   :  { %4069 = vst [vmem:[#allocation2 + $0x78] sm:$0xff] %v4050_v0 }
 0x4ce   :  { %5096 = shalt.err (!%p5093_p4)
}
 0x4cf   :  { %s5110_s16 = smov 1024   ;;  %s5111_s17 = smov 64  }
 0x4d0   :  { %4083 = dma.vmem_to_hbm [thread:$0]  %s4078_s8, 2048, %s6844_s10, [#allocation3], %s5110_s16, %s5110_s16, %s5111_s17  }
 0x4d1   :  { %5105 = dma.done.wait [#allocation3], 2048  }
 0x4d2   :  { %5106 = vsyncadd [#allocation3], 4294965248 }
 0x4d3   :  { %4089 = vsyncpa [#allocation3], 1 }

</bundles_post_ra>
